<compile_context>
chip_gen: v7x
topology: tpu7x:2x2x1
jax: 0.10.0
libtpu: 0.0.40
codegen_flags: <defaults>
</compile_context>

<pallas_src>
import functools

import jax
import jax.numpy as jnp
from jax import lax
from jax.experimental import pallas as pl
from jax.experimental.pallas import tpu as pltpu


def _vq_kernel(x_ref, cb_ref, c2_ref, xq_ref, idx_ref, sse_ref, *,
               n_valid, bf16_distance):
    z = x_ref[...].astype(jnp.float32)        # (TN, D)
    cb = cb_ref[...].astype(jnp.float32)      # (K,  D)  (loop-invariant, VMEM resident)
    c2 = c2_ref[...]                          # (1,  K)  precomputed ||c||^2 (hoisted)
    tn = z.shape[0]
    k = cb.shape[0]

    # Distance up to a per-row constant: d' = ||c||^2 - 2 z c^T.
    # The dropped ||z||^2 term does not change the argmin.
    if bf16_distance:
        zc = lax.dot_general(
            z.astype(jnp.bfloat16), cb.astype(jnp.bfloat16),
            dimension_numbers=(((1,), (1,)), ((), ())),
            preferred_element_type=jnp.float32)                   # (TN, K)
    else:
        zc = lax.dot_general(
            z, cb,
            dimension_numbers=(((1,), (1,)), ((), ())),
            preferred_element_type=jnp.float32)                   # (TN, K)
    d = c2 - 2.0 * zc                                             # (TN, K)

    # First-occurrence argmin over codes (matches torch.argmin).
    iota_k = lax.broadcasted_iota(jnp.int32, (tn, k), 1)
    dmin = jnp.min(d, axis=-1, keepdims=True)
    idx_col = jnp.min(jnp.where(d == dmin, iota_k, k),
                      axis=-1, keepdims=True)                     # (TN, 1)

    # Exactly one 1 per row.
    onehot = (iota_k == idx_col).astype(jnp.float32)              # (TN, K)

    # Gather quantized vectors on the MXU in f32 so x_q equals exact codebook rows.
    xq = jnp.dot(onehot, cb, preferred_element_type=jnp.float32)  # (TN, D)
    xq_ref[...] = xq.astype(xq_ref.dtype)

    # Lane-dense index row: (1, TN) via an MXU contraction over K (exact for K < 2^24).
    iota_row = lax.broadcasted_iota(jnp.int32, (1, k), 1).astype(jnp.float32)
    idx_row = lax.dot_general(
        iota_row, onehot,
        dimension_numbers=(((1,), (1,)), ((), ())),
        preferred_element_type=jnp.float32)                       # (1, TN)
    idx_ref[...] = idx_row.astype(jnp.int32)

    # Exact per-tile partial SSE; padded rows (beyond the true N) masked out.
    diff = xq - z
    row_sse = jnp.sum(diff * diff, axis=1, keepdims=True)         # (TN, 1)
    row_id = lax.broadcasted_iota(jnp.int32, (tn, 1), 0) + pl.program_id(0) * tn
    sse_ref[0, 0] = jnp.sum(jnp.where(row_id < n_valid, row_sse, 0.0))


def vq_forward(x, codebooks, *, p=0, alpha=0.2, beta=0.8, iso=0,
               use_sk=False, tile_n=256, bf16_distance=False,
               vmem_limit_bytes=48 * 1024 * 1024):
    """Forward pass of VectorQuantizer (argmin quantization path)."""
    if use_sk:
        # TODO(synk): sinkhorn_algorithm branch (use_sk=True, sk_epsilon>0) is not
        # defined in the reference module source; only the argmin path is implemented.
        raise NotImplementedError("Sinkhorn quantization path not implemented")

    assert tile_n % 8 == 0, "tile_n must be a multiple of 8 (sublane tiling)"

    e_dim = x.shape[-1]
    idx_cb = min(len(codebooks), p + 1)
    if not iso:
        cb = jnp.concatenate([codebooks[i] for i in range(idx_cb)], axis=0)
    else:
        cb = codebooks[idx_cb - 1]
    cb = cb.astype(jnp.float32)
    k = cb.shape[0]
    # Hoisted loop-invariant codebook norms (computed once, not per grid step).
    c2 = jnp.sum(cb * cb, axis=1)[None, :]                        # (1, K)

    latent = x.reshape(-1, e_dim).astype(jnp.float32)
    n = latent.shape[0]
    num_tiles = (n + tile_n - 1) // tile_n
    n_pad = num_tiles * tile_n
    if n_pad != n:
        latent = jnp.pad(latent, ((0, n_pad - n), (0, 0)))

    kernel = functools.partial(_vq_kernel, n_valid=n, bf16_distance=bf16_distance)

    # TODO(synk): for large concatenated codebooks (K >~ 2048), add a second
    # ("arbitrary") grid axis over K with an online running-min/argmin + x_q
    # accumulator in VMEM scratch so live intermediates stay O(tile_n x K_tile),
    # and consider pipeline_mode=pl.Buffered(1) on the resident codebook block
    # to halve its VMEM footprint on v7x.
    xq_flat, idx_rows, sse = pl.pallas_call(
        kernel,
        out_shape=(
            jax.ShapeDtypeStruct((n_pad, e_dim), jnp.float32),
            jax.ShapeDtypeStruct((num_tiles, tile_n), jnp.int32),
            jax.ShapeDtypeStruct((num_tiles, 1), jnp.float32),
        ),
        grid_spec=pltpu.PrefetchScalarGridSpec(
            num_scalar_prefetch=0,
            grid=(num_tiles,),
            in_specs=[
                pl.BlockSpec((tile_n, e_dim), lambda i: (i, 0)),   # latent tile
                pl.BlockSpec((k, e_dim), lambda i: (0, 0)),        # full codebook
                pl.BlockSpec((1, k), lambda i: (0, 0)),            # ||c||^2 row
            ],
            out_specs=[
                pl.BlockSpec((tile_n, e_dim), lambda i: (i, 0)),   # x_q tile
                pl.BlockSpec((1, tile_n), lambda i: (i, 0)),       # lane-dense indices
                pl.BlockSpec((1, 1), lambda i: (i, 0),
                             memory_space=pltpu.MemorySpace.SMEM), # per-tile SSE
            ],
        ),
        compiler_params=pltpu.CompilerParams(
            dimension_semantics=("parallel",),
            vmem_limit_bytes=vmem_limit_bytes),
    )(latent, cb, c2)

    mse = jnp.sum(sse) / (n * e_dim)
    commitment_loss = mse          # value of F.mse_loss(x_q.detach(), x)
    codebook_loss = mse            # value of F.mse_loss(x_q, x.detach())
    loss = alpha * codebook_loss + beta * commitment_loss

    x_q = xq_flat[:n].reshape(x.shape)                 # x + (x_q - x).detach() == x_q (fwd)
    indices = idx_rows.reshape(-1)[:n].reshape(x.shape[:-1])
    return x_q, loss, indices


if __name__ == "__main__":
    key = jax.random.PRNGKey(0)
    n_e = (64, 64)          # two codebook levels
    e_dim = 32
    B, S = 2, 8             # x: (B, S, e_dim) -> latent N = 16 rows

    k_cb, k_x = jax.random.split(key)
    cb_keys = jax.random.split(k_cb, len(n_e))
    codebooks = [
        jax.random.uniform(cb_keys[i], (n_e[i], e_dim), jnp.float32,
                           minval=-1.0 / n_e[i], maxval=1.0 / n_e[i])
        for i in range(len(n_e))
    ]
    x = jax.random.normal(k_x, (B, S, e_dim), jnp.float32) * 0.05

    x_q, loss, indices = vq_forward(x, codebooks, p=1, alpha=0.2, beta=0.8)
    jax.block_until_ready((x_q, loss, indices))

    # Pure-JAX reference check (torch semantics: full ||z||^2+||c||^2-2zc distance).
    cb_ref = jnp.concatenate(codebooks, axis=0)
    lat = x.reshape(-1, e_dim)
    d_ref = (jnp.sum(lat ** 2, axis=1, keepdims=True)
             + jnp.sum(cb_ref ** 2, axis=1)[None, :]
             - 2.0 * lat @ cb_ref.T)
    idx_ref = jnp.argmin(d_ref, axis=-1).astype(jnp.int32)
    xq_ref = cb_ref[idx_ref].reshape(x.shape)
    mse_ref = jnp.mean((xq_ref - x) ** 2)
    loss_ref = 0.2 * mse_ref + 0.8 * mse_ref

    assert indices.shape == x.shape[:-1]
    assert jnp.array_equal(indices.reshape(-1), idx_ref)
    assert jnp.allclose(x_q, xq_ref, atol=1e-5)
    assert jnp.allclose(loss, loss_ref, atol=1e-6)

    print("KERNEL_OK")
</pallas_src>

<mosaic_0001>
module attributes {stable_mosaic.version = 11 : i64} {
  func.func @_vq_kernel(%arg0: i32, %arg1: memref<256x32xf32, #tpu.memory_space<vmem>>, %arg2: memref<128x32xf32, #tpu.memory_space<vmem>>, %arg3: memref<1x128xf32, #tpu.memory_space<vmem>>, %arg4: memref<256x32xf32, #tpu.memory_space<vmem>>, %arg5: memref<1x256xi32, #tpu.memory_space<vmem>>, %arg6: memref<1x1xf32, #tpu.memory_space<smem>>) attributes {dimension_semantics = [#tpu.dimension_semantics<parallel>], iteration_bounds = array<i64: 1>, scalar_prefetch = 0 : i64, scratch_operands = 0 : i64, tpu.core_type = #tpu.core_type<tc>, window_params = [{transform_indices = @transform_0, window_bounds = array<i64: 256, 32>}, {pipeline_mode = #tpu.pipeline_mode<synchronous>, transform_indices = @transform_1, window_bounds = array<i64: 128, 32>}, {pipeline_mode = #tpu.pipeline_mode<synchronous>, transform_indices = @transform_2, window_bounds = array<i64: 1, 128>}, {transform_indices = @transform_3, window_bounds = array<i64: 256, 32>}, {transform_indices = @transform_4, window_bounds = array<i64: 1, 256>}, {transform_indices = @transform_5, window_bounds = array<i64: 1, 1>}]} {
    %c0 = arith.constant 0 : index
    %c0_0 = arith.constant 0 : index
    %0 = vector.load %arg1[%c0, %c0_0] : memref<256x32xf32, #tpu.memory_space<vmem>>, vector<256x32xf32>
    %c0_1 = arith.constant 0 : index
    %c0_2 = arith.constant 0 : index
    %1 = vector.load %arg2[%c0_1, %c0_2] : memref<128x32xf32, #tpu.memory_space<vmem>>, vector<128x32xf32>
    %c0_3 = arith.constant 0 : index
    %c0_4 = arith.constant 0 : index
    %2 = vector.load %arg3[%c0_3, %c0_4] : memref<1x128xf32, #tpu.memory_space<vmem>>, vector<1x128xf32>
    %cst = arith.constant dense<0.000000e+00> : vector<256x128xf32>
    %3 = tpu.matmul %0, %1, %cst {dimension_numbers = #tpu.dot_dimension_numbers<[1], [1], [0], [0], [0, 0, 1, 0], [], []>} : vector<256x32xf32>, vector<128x32xf32>, vector<256x128xf32> -> vector<256x128xf32>
    %cst_5 = arith.constant 2.000000e+00 : f32
    %4 = vector.broadcast %cst_5 : f32 to vector<256x128xf32>
    %5 = arith.mulf %4, %3 : vector<256x128xf32>
    %6 = vector.broadcast %2 : vector<1x128xf32> to vector<256x128xf32>
    %7 = arith.subf %6, %5 : vector<256x128xf32>
    %8 = tpu.iota {dimensions = array<i32: 1>} : vector<256x128xi32>
    %cst_6 = arith.constant dense<0x7F800000> : vector<256xf32>
    %9 = vector.multi_reduction <minimumf>, %7, %cst_6 [1] : vector<256x128xf32> to vector<256xf32>
    %10 = vector.shape_cast %9 : vector<256xf32> to vector<256x1xf32>
    %11 = vector.broadcast %10 : vector<256x1xf32> to vector<256x128xf32>
    %12 = arith.cmpf oeq, %7, %11 : vector<256x128xf32>
    %c128_i32 = arith.constant 128 : i32
    %13 = vector.broadcast %c128_i32 : i32 to vector<256x128xi32>
    %14 = arith.select %12, %8, %13 : vector<256x128xi1>, vector<256x128xi32>
    %cst_7 = arith.constant dense<2147483647> : vector<256xi32>
    %15 = vector.multi_reduction <minsi>, %14, %cst_7 [1] : vector<256x128xi32> to vector<256xi32>
    %16 = vector.shape_cast %15 : vector<256xi32> to vector<256x1xi32>
    %17 = vector.broadcast %16 : vector<256x1xi32> to vector<256x128xi32>
    %18 = arith.cmpi eq, %8, %17 : vector<256x128xi32>
    %19 = arith.extui %18 : vector<256x128xi1> to vector<256x128xi32>
    %20 = arith.sitofp %19 : vector<256x128xi32> to vector<256x128xf32>
    %cst_8 = arith.constant dense<0.000000e+00> : vector<256x32xf32>
    %21 = tpu.matmul %20, %1, %cst_8 {dimension_numbers = #tpu.dot_dimension_numbers<[1], [0], [0], [1], [0, 0, 1, 1], [], []>} : vector<256x128xf32>, vector<128x32xf32>, vector<256x32xf32> -> vector<256x32xf32>
    %c0_9 = arith.constant 0 : index
    %c0_10 = arith.constant 0 : index
    %22 = vector.load %arg4[%c0_9, %c0_10] : memref<256x32xf32, #tpu.memory_space<vmem>>, vector<256x32xf32>
    tpu.vector_store %arg4[%c0_9, %c0_10], %21 {strides = array<i32>} : memref<256x32xf32, #tpu.memory_space<vmem>>, vector<256x32xf32>,
    %23 = tpu.iota {dimensions = array<i32: 1>} : vector<1x128xi32>
    %24 = arith.sitofp %23 : vector<1x128xi32> to vector<1x128xf32>
    %cst_11 = arith.constant dense<0.000000e+00> : vector<1x256xf32>
    %25 = tpu.matmul %24, %20, %cst_11 {dimension_numbers = #tpu.dot_dimension_numbers<[1], [1], [0], [0], [0, 0, 1, 0], [], []>} : vector<1x128xf32>, vector<256x128xf32>, vector<1x256xf32> -> vector<1x256xf32>
    %26 = arith.fptosi %25 : vector<1x256xf32> to vector<1x256xi32>
    %c0_12 = arith.constant 0 : index
    %c0_13 = arith.constant 0 : index
    %27 = vector.load %arg5[%c0_12, %c0_13] : memref<1x256xi32, #tpu.memory_space<vmem>>, vector<1x256xi32>
    tpu.vector_store %arg5[%c0_12, %c0_13], %26 {strides = array<i32>} : memref<1x256xi32, #tpu.memory_space<vmem>>, vector<1x256xi32>,
    %28 = arith.subf %21, %0 : vector<256x32xf32>
    %29 = arith.mulf %28, %28 : vector<256x32xf32>
    %cst_14 = arith.constant dense<0.000000e+00> : vector<256xf32>
    %30 = vector.multi_reduction <add>, %29, %cst_14 [1] : vector<256x32xf32> to vector<256xf32>
    %31 = vector.shape_cast %30 : vector<256xf32> to vector<256x1xf32>
    %32 = tpu.iota {dimensions = array<i32: 0>} : vector<256x1xi32>
    %c256_i32 = arith.constant 256 : i32
    %33 = arith.muli %arg0, %c256_i32 : i32
    %34 = vector.broadcast %33 : i32 to vector<256x1xi32>
    %35 = arith.addi %32, %34 : vector<256x1xi32>
    %c16_i32 = arith.constant 16 : i32
    %36 = vector.broadcast %c16_i32 : i32 to vector<256x1xi32>
    %37 = arith.cmpi slt, %35, %36 : vector<256x1xi32>
    %cst_15 = arith.constant 0.000000e+00 : f32
    %38 = vector.broadcast %cst_15 : f32 to vector<256x1xf32>
    %39 = arith.select %37, %31, %38 : vector<256x1xi1>, vector<256x1xf32>
    %40 = vector.shape_cast %39 : vector<256x1xf32> to vector<1x256x1xf32>
    %cst_16 = arith.constant dense<0.000000e+00> : vector<1xf32>
    %41 = vector.multi_reduction <add>, %40, %cst_16 [1, 2] : vector<1x256x1xf32> to vector<1xf32>
    %42 = vector.shape_cast %41 : vector<1xf32> to vector<1x1x1xf32>
    %43 = vector.extract %42[0, 0, 0] : f32 from vector<1x1x1xf32>
    %c0_17 = arith.constant 0 : index
    %c0_18 = arith.constant 0 : index
    %44 = memref.load %arg6[%c0_17, %c0_18] : memref<1x1xf32, #tpu.memory_space<smem>>
    memref.store %43, %arg6[%c0_17, %c0_18] : memref<1x1xf32, #tpu.memory_space<smem>>
    return
  }
  func.func @transform_0(%arg0: i32) -> (i32, i32) {
    %c0_i32 = arith.constant 0 : i32
    %c0_i32_0 = arith.constant 0 : i32
    return %arg0, %c0_i32 : i32, i32
  }
  func.func @transform_1(%arg0: i32) -> (i32, i32) {
    %c0_i32 = arith.constant 0 : i32
    %c0_i32_0 = arith.constant 0 : i32
    %c0_i32_1 = arith.constant 0 : i32
    return %c0_i32, %c0_i32_0 : i32, i32
  }
  func.func @transform_2(%arg0: i32) -> (i32, i32) {
    %c0_i32 = arith.constant 0 : i32
    %c0_i32_0 = arith.constant 0 : i32
    %c0_i32_1 = arith.constant 0 : i32
    return %c0_i32, %c0_i32_0 : i32, i32
  }
  func.func @transform_3(%arg0: i32) -> (i32, i32) {
    %c0_i32 = arith.constant 0 : i32
    %c0_i32_0 = arith.constant 0 : i32
    return %arg0, %c0_i32 : i32, i32
  }
  func.func @transform_4(%arg0: i32) -> (i32, i32) {
    %c0_i32 = arith.constant 0 : i32
    %c0_i32_0 = arith.constant 0 : i32
    return %arg0, %c0_i32 : i32, i32
  }
  func.func @transform_5(%arg0: i32) -> (i32, i32) {
    %c0_i32 = arith.constant 0 : i32
    %c0_i32_0 = arith.constant 0 : i32
    return %arg0, %c0_i32 : i32, i32
  }
}

</mosaic_0001>

<bundles_post_ra>
// kernel: tpu_custom_call.1
= control target key start
LH: loop header
LB: loop body
LE: loop exit
PB: predicated region body
PF: predicated region fallthrough
CT: control target
= control target key end

     0   :  { %11 = vsyncpa [#allocation3], 0  ;;  %vm3837_vm0 = vcmask 261120   ;;  %s3831_s0 = inlined_call_operand.vmem [shape: f32[256,32], index: 0, kind: input, shape index: {}]   ;;  %s3832_s1 = inlined_call_operand.vmem [shape: f32[128,32], index: 1, kind: input, shape index: {}]   ;;  %s3833_s2 = inlined_call_operand.vmem [shape: f32[1,128], index: 2, kind: input, shape index: {}]   ;;  %s3834_s3 = inlined_call_operand.vmem [shape: f32[256,32], index: 3, kind: output, shape index: {0}]   ;;  %s3835_s4 = inlined_call_operand.hbm [shape: s32[1,256], index: 4, kind: output, shape index: {1}]   ;;  %s3836_s5 = inlined_call_operand.hbm [shape: f32[1,1], index: 5, kind: output, shape index: {2}]  }
   0x1   :  { %v51_v0 = vld [vmem:[%s3832_s1] sm:$0xff]  ;;  %v52_v1 = vld [vmem:[%s3832_s1 + $0x8] sm:$0xff]  ;;  %v53_v2 = vld [vmem:[%s3832_s1 + $0x10] sm:$0xff] }
   0x2   :  { %v2365_v3 = vpack.c.bf16 %v52_v1, %v51_v0  ;;  %vm2572_vm1 = vmpackc.low %vm3837_vm0, %vm3837_vm0  ;;  %v54_v5 = vld [vmem:[%s3832_s1 + $0x18] sm:$0xff]  ;;  %v55_v7 = vld [vmem:[%s3832_s1 + $0x20] sm:$0xff] }
   0x3   :  { %v2371_v6 = vpack.c.bf16 %v54_v5, %v53_v2  ;;  %v56_v8 = vld [vmem:[%s3832_s1 + $0x28] sm:$0xff]  ;;  %v19_v9 = vld [vmem:[%s3831_s0] sm:$0xff]  ;;  %v57_v11 = vld [vmem:[%s3832_s1 + $0x30] sm:$0xff] }
   0x4   :  { %2367 = vmatprep.subr.msk.bf16.mxu0 %vm2572_vm1, %v2365_v3  ;;  %2414 = vmatprep.subr.bf16.mxu1 %v2365_v3  ;;  %v2377_v10 = vpack.c.bf16 %v56_v8, %v55_v7  ;;  %v58_v12 = vld [vmem:[%s3832_s1 + $0x38] sm:$0xff]  ;;  %v59_v14 = vld [vmem:[%s3832_s1 + $0x40] sm:$0xff]  ;;  %v60_v15 = vld [vmem:[%s3832_s1 + $0x48] sm:$0xff] }
   0x5   :  { %2370 = vmatpush3.bf16.xpose.msk.msra.mxu0 %vm2572_vm1, %v2365_v3  ;;  %2416 = vmatpush3.bf16.msra.mxu1 %v2365_v3  ;;  %v2383_v13 = vpack.c.bf16 %v58_v12, %v57_v11  ;;  %v2389_v16 = vpack.c.bf16 %v60_v15, %v59_v14  ;;  %v61_v17 = vld [vmem:[%s3832_s1 + $0x50] sm:$0xff]  ;;  %v62_v18 = vld [vmem:[%s3832_s1 + $0x58] sm:$0xff] }
   0x6   :  { %2373 = vmatprep.subr.msk.bf16.mxu0 %vm2572_vm1, %v2371_v6  ;;  %2418 = vmatprep.subr.bf16.mxu1 %v2371_v6 }
   0x7   :  { %2237 = vmatprep.mubr.msk.f32.mxu0 %vm3837_vm0, %v19_v9 }
   0x9   :  { %2420 = vmatpush3.bf16.msra.mxu1 %v2371_v6 }
   0xa   :  { %2422 = vmatprep.subr.bf16.mxu1 %v2377_v10 }
   0xd   :  { %2376 = vmatpush3.bf16.xpose.msk.msra.mxu0 %vm2572_vm1, %v2371_v6  ;;  %2424 = vmatpush3.bf16.msra.mxu1 %v2377_v10 }
   0xe   :  { %2379 = vmatprep.subr.msk.bf16.mxu0 %vm2572_vm1, %v2377_v10  ;;  %2426 = vmatprep.subr.bf16.mxu1 %v2383_v13 }
  0x11   :  { %2428 = vmatpush3.bf16.msra.mxu1 %v2383_v13 }
  0x12   :  { %12 = vsyncpa [#allocation4], 0  ;;  %2430 = vmatprep.subr.bf16.mxu1 %v2389_v16  ;;  %v2395_v19 = vpack.c.bf16 %v62_v18, %v61_v17  ;;  %v63_v20 = vld [vmem:[%s3832_s1 + $0x60] sm:$0xff]  ;;  %v64_v21 = vld [vmem:[%s3832_s1 + $0x68] sm:$0xff]  ;;  %s2529_s24 = smov [#allocation2]  }
  0x13   :  { %v2401_v22 = vpack.c.bf16 %v64_v21, %v63_v20  ;;  %v65_v23 = vld [vmem:[%s3832_s1 + $0x70] sm:$0xff]  ;;  %v66_v24 = vld [vmem:[%s3832_s1 + $0x78] sm:$0xff]  ;;  %v20_v26 = vld [vmem:[%s3831_s0 + $0x8] sm:$0xff]  ;;  %s1907_s25 = sshll.u32 %s2529_s24, 4  ;;  %s2490_s1 = scalar_lea.hbm %s3836_s5, 16  ;;  %s1908_s25 = int_to_ptr.vmem [resolvable:$true] %s1907_s25 }
  0x14   :  { %v2407_v25 = vpack.c.bf16 %v66_v24, %v65_v23  ;;  %v21_v27 = vld [vmem:[%s3831_s0 + $0x10] sm:$0xff]  ;;  %v22_v28 = vld [vmem:[%s3831_s0 + $0x18] sm:$0xff]  ;;  %v23_v29 = vld [vmem:[%s3831_s0 + $0x20] sm:$0xff]  ;;  %p2491_p0 = scmp.ne.s32.totalorder %s3836_s5, %s2490_s1  ;;  %p2494_p1 = scmp.lt.u32.totalorder %s2490_s1, %s3836_s5 }
  0x15   :  { %2382 = vmatpush3.bf16.xpose.msk.msra.mxu0 %vm2572_vm1, %v2377_v10  ;;  %2432 = vmatpush3.bf16.msra.mxu1 %v2389_v16  ;;  %v24_v30 = vld [vmem:[%s3831_s0 + $0x28] sm:$0xff]  ;;  %v25_v31 = vld [vmem:[%s3831_s0 + $0x30] sm:$0xff]  ;;  %v26_v32 = vld [vmem:[%s3831_s0 + $0x38] sm:$0xff] }
  0x16   :  { %2385 = vmatprep.subr.msk.bf16.mxu0 %vm2572_vm1, %v2383_v13  ;;  %2434 = vmatprep.subr.bf16.mxu1 %v2395_v19  ;;  %v27_v33 = vld [vmem:[%s3831_s0 + $0x40] sm:$0xff]  ;;  %v28_v34 = vld [vmem:[%s3831_s0 + $0x48] sm:$0xff]  ;;  %v29_v35 = vld [vmem:[%s3831_s0 + $0x50] sm:$0xff]  ;;  %p2496_p2 = pnand %p2494_p1, %p2491_p0 }
  0x17   :  { %v30_v36 = vld [vmem:[%s3831_s0 + $0x58] sm:$0xff]  ;;  %v31_v37 = vld [vmem:[%s3831_s0 + $0x60] sm:$0xff]  ;;  %v32_v38 = vld [vmem:[%s3831_s0 + $0x68] sm:$0xff] }
  0x18   :  { %v33_v39 = vld [vmem:[%s3831_s0 + $0x70] sm:$0xff]  ;;  %v34_v40 = vld [vmem:[%s3831_s0 + $0x78] sm:$0xff]  ;;  %v35_v41 = vld [vmem:[%s3831_s0 + $0x80] sm:$0xff] }
  0x19   :  { %2436 = vmatpush3.bf16.msra.mxu1 %v2395_v19  ;;  %v36_v42 = vld [vmem:[%s3831_s0 + $0x88] sm:$0xff]  ;;  %v37_v43 = vld [vmem:[%s3831_s0 + $0x90] sm:$0xff]  ;;  %v38_v44 = vld [vmem:[%s3831_s0 + $0x98] sm:$0xff] }
  0x1a   :  { %2438 = vmatprep.subr.bf16.mxu1 %v2401_v22  ;;  %v39_v45 = vld [vmem:[%s3831_s0 + $0xa0] sm:$0xff]  ;;  %v40_v46 = vld [vmem:[%s3831_s0 + $0xa8] sm:$0xff]  ;;  %v41_v47 = vld [vmem:[%s3831_s0 + $0xb0] sm:$0xff] }
  0x1b   :  { %v42_v48 = vld [vmem:[%s3831_s0 + $0xb8] sm:$0xff]  ;;  %v43_v49 = vld [vmem:[%s3831_s0 + $0xc0] sm:$0xff]  ;;  %v44_v50 = vld [vmem:[%s3831_s0 + $0xc8] sm:$0xff] }
  0x1c   :  { %v45_v51 = vld [vmem:[%s3831_s0 + $0xd0] sm:$0xff]  ;;  %v46_v52 = vld [vmem:[%s3831_s0 + $0xd8] sm:$0xff]  ;;  %v47_v53 = vld [vmem:[%s3831_s0 + $0xe0] sm:$0xff] }
  0x1d   :  { %2388 = vmatpush3.bf16.xpose.msk.msra.mxu0 %vm2572_vm1, %v2383_v13  ;;  %2440 = vmatpush3.bf16.msra.mxu1 %v2401_v22  ;;  %v48_v54 = vld [vmem:[%s3831_s0 + $0xe8] sm:$0xff]  ;;  %v49_v55 = vld [vmem:[%s3831_s0 + $0xf0] sm:$0xff]  ;;  %v50_v56 = vld [vmem:[%s3831_s0 + $0xf8] sm:$0xff] }
  0x1e   :  { %2391 = vmatprep.subr.msk.bf16.mxu0 %vm2572_vm1, %v2389_v16  ;;  %2442 = vmatprep.subr.bf16.mxu1 %v2407_v25  ;;  %v2778_v59 = vld [vmem:[%s3833_s2] ss:$0 sm:$0xff] }
  0x21   :  { %2444 = vmatpush3.bf16.msra.mxu1 %v2407_v25 }
  0x25   :  { %2394 = vmatpush3.bf16.xpose.msk.msra.mxu0 %vm2572_vm1, %v2389_v16 }
  0x26   :  { %2397 = vmatprep.subr.msk.bf16.mxu0 %vm2572_vm1, %v2395_v19 }
  0x2d   :  { %2400 = vmatpush3.bf16.xpose.msk.msra.mxu0 %vm2572_vm1, %v2395_v19 }
  0x2e   :  { %2403 = vmatprep.subr.msk.bf16.mxu0 %vm2572_vm1, %v2401_v22 }
  0x35   :  { %2406 = vmatpush3.bf16.xpose.msk.msra.mxu0 %vm2572_vm1, %v2401_v22 }
  0x36   :  { %2409 = vmatprep.subr.msk.bf16.mxu0 %vm2572_vm1, %v2407_v25 }
  0x3d   :  { %2412 = vmatpush3.bf16.xpose.msk.msra.mxu0 %vm2572_vm1, %v2407_v25 }
  0x44   :  { %2238 = vmatmul.mubr.msk.f32.vlgmr.msra.gmra.mrb[0].mxu0 %vm3837_vm0, %v20_v26 }
  0x45   :  { %2240 = vmatprep.mubr.msk.f32.mxu0 %vm3837_vm0, %v21_v27 }
  0x48   :  { %2241 = vmatmul.mubr.msk.f32.gmra.mrb[2].mxu0 %vm3837_vm0, %v22_v28 }
  0x49   :  { %2243 = vmatprep.mubr.msk.f32.mxu0 %vm3837_vm0, %v23_v29 }
  0x4c   :  { %2244 = vmatmul.mubr.msk.f32.gmra.mrb[4].mxu0 %vm3837_vm0, %v24_v30 }
  0x4d   :  { %2246 = vmatprep.mubr.msk.f32.mxu0 %vm3837_vm0, %v25_v31 }
  0x50   :  { %2247 = vmatmul.mubr.msk.f32.gmra.mrb[6].mxu0 %vm3837_vm0, %v26_v32 }
  0x51   :  { %2249 = vmatprep.mubr.msk.f32.mxu0 %vm3837_vm0, %v27_v33 }
  0x54   :  { %2250 = vmatmul.mubr.msk.f32.gmra.mrb[8].mxu0 %vm3837_vm0, %v28_v34 }
  0x55   :  { %2252 = vmatprep.mubr.msk.f32.mxu0 %vm3837_vm0, %v29_v35 }
  0x58   :  { %2253 = vmatmul.mubr.msk.f32.gmra.mrb[10].mxu0 %vm3837_vm0, %v30_v36 }
  0x59   :  { %2255 = vmatprep.mubr.msk.f32.mxu0 %vm3837_vm0, %v31_v37 }
  0x5c   :  { %2256 = vmatmul.mubr.msk.f32.gmra.mrb[12].mxu0 %vm3837_vm0, %v32_v38 }
  0x5d   :  { %2258 = vmatprep.mubr.msk.f32.mxu0 %vm3837_vm0, %v33_v39 }
  0x60   :  { %2259 = vmatmul.mubr.msk.f32.gmra.mrb[14].mxu0 %vm3837_vm0, %v34_v40 }
  0x61   :  { %2261 = vmatprep.mubr.msk.f32.mxu0 %vm3837_vm0, %v35_v41 }
  0x64   :  { %2262 = vmatmul.mubr.msk.f32.gmra.mrb[16].mxu0 %vm3837_vm0, %v36_v42 }
  0x65   :  { %2264 = vmatprep.mubr.msk.f32.mxu0 %vm3837_vm0, %v37_v43 }
  0x68   :  { %2265 = vmatmul.mubr.msk.f32.gmra.mrb[18].mxu0 %vm3837_vm0, %v38_v44 }
  0x69   :  { %2267 = vmatprep.mubr.msk.f32.mxu0 %vm3837_vm0, %v39_v45 }
  0x6c   :  { %2268 = vmatmul.mubr.msk.f32.gmra.mrb[20].mxu0 %vm3837_vm0, %v40_v46 }
  0x6d   :  { %2270 = vmatprep.mubr.msk.f32.mxu0 %vm3837_vm0, %v41_v47 }
  0x70   :  { %2271 = vmatmul.mubr.msk.f32.gmra.mrb[22].mxu0 %vm3837_vm0, %v42_v48 }
  0x71   :  { %2273 = vmatprep.mubr.msk.f32.mxu0 %vm3837_vm0, %v43_v49 }
  0x74   :  { %2274 = vmatmul.mubr.msk.f32.gmra.mrb[24].mxu0 %vm3837_vm0, %v44_v50 }
  0x75   :  { %2276 = vmatprep.mubr.msk.f32.mxu0 %vm3837_vm0, %v45_v51 }
  0x78   :  { %2277 = vmatmul.mubr.msk.f32.gmra.mrb[26].mxu0 %vm3837_vm0, %v46_v52 }
  0x79   :  { %2279 = vmatprep.mubr.msk.f32.mxu0 %vm3837_vm0, %v47_v53 }
  0x7c   :  { %2280 = vmatmul.mubr.msk.f32.gmra.mrb[28].mxu0 %vm3837_vm0, %v48_v54 }
  0x7d   :  { %2282 = vmatprep.mubr.msk.f32.mxu0 %vm3837_vm0, %v49_v55 }
  0x80   :  { %2283 = vmatmul.mubr.msk.f32.gmra.mrb[30].mxu0 %vm3837_vm0, %v50_v56 }
 0x117   :  { %v2239_v57 = vpop.f32.mrb[0].mxu0 }
 0x118   :  { %v279_v58 = vpop.f32.mrb[1].mxu0  ;;  %v439_v61 = vmul.f32 2.0, %v2239_v57 }
 0x119   :  { %v438_v60 = vmul.f32 2.0, %v279_v58 }
 0x11a   :  { %v2787_v1 = vsub.f32 %v2778_v59, %v439_v61 }
 0x11b   :  { %v2781_v62 = vsub.f32 %v2778_v59, %v438_v60  ;;  %v2783_v63 = vpop.f32.mrb[2].mxu0 }
 0x11c   :  { %v289_v0 = vpop.f32.mrb[3].mxu0 }
 0x11d   :  { %510 = vmin.xlane.f32.xlu0 %v2781_v62  ;;  %v440_v16 = vmul.f32 2.0, %v289_v0 }
 0x11f   :  { %v2789_v2 = vpop.f32.mrb[4].mxu0  ;;  %v2809_v22 = vsub.f32 %v2778_v59, %v440_v16 }
 0x120   :  { %v299_v3 = vpop.f32.mrb[5].mxu0 }
 0x121   :  { %512 = vmin.xlane.f32.xlu0 %v2787_v1  ;;  %v442_v21 = vmul.f32 2.0, %v299_v3  ;;  %v508_v3 = vlaneseq }
 0x123   :  { %v2248_v4 = vpop.f32.mrb[6].mxu0  ;;  %v2815_v26 = vsub.f32 %v2778_v59, %v442_v21 }
 0x124   :  { %v309_v5 = vpop.f32.mrb[7].mxu0  ;;  %v445_v33 = vmul.f32 2.0, %v2248_v4  ;;  %v2881_v4 = vand.u32 127, %v508_v3 }
 0x125   :  { %v444_v29 = vmul.f32 2.0, %v309_v5 }
 0x126   :  { %v2833_v38 = vsub.f32 %v2778_v59, %v445_v33 }
 0x127   :  { %v2792_v6 = vpop.f32.mrb[8].mxu0  ;;  %v2827_v34 = vsub.f32 %v2778_v59, %v444_v29 }
 0x128   :  { %v319_v7 = vpop.f32.mrb[9].mxu0 }
 0x129   :  { %v446_v37 = vmul.f32 2.0, %v319_v7 }
 0x12b   :  { %v2794_v8 = vpop.f32.mrb[10].mxu0  ;;  %v2839_v42 = vsub.f32 %v2778_v59, %v446_v37 }
 0x12c   :  { %v329_v9 = vpop.f32.mrb[11].mxu0 }
 0x12d   :  { %v448_v45 = vmul.f32 2.0, %v329_v9 }
 0x12f   :  { %v2796_v10 = vpop.f32.mrb[12].mxu0  ;;  %v2849_v48 = vsub.f32 %v2778_v59, %v448_v45 }
 0x130   :  { %v339_v11 = vpop.f32.mrb[13].mxu0 }
 0x131   :  { %v450_v47 = vmul.f32 2.0, %v339_v11 }
 0x133   :  { %v2798_v12 = vpop.f32.mrb[14].mxu0  ;;  %v2853_v50 = vsub.f32 %v2778_v59, %v450_v47 }
 0x134   :  { %v349_v13 = vpop.f32.mrb[15].mxu0 }
 0x135   :  { %v452_v51 = vmul.f32 2.0, %v349_v13 }
 0x137   :  { %v2800_v14 = vpop.f32.mrb[16].mxu0  ;;  %v2861_v54 = vsub.f32 %v2778_v59, %v452_v51 }
 0x138   :  { %v359_v15 = vpop.f32.mrb[17].mxu0  ;;  %v455_v16 = vmul.f32 2.0, %v2800_v14  ;;  %v443_v14 = vmul.f32 2.0, %v2789_v2 }
 0x139   :  { %v454_v17 = vmul.f32 2.0, %v359_v15 }
 0x13a   :  { %v2902_v21 = vsub.f32 %v2778_v59, %v455_v16 }
 0x13b   :  { %v2803_v18 = vsub.f32 %v2778_v59, %v454_v17  ;;  %v2266_v19 = vpop.f32.mrb[18].mxu0 }
 0x13c   :  { %v2805_v20 = vpop.f32.mrb[19].mxu0  ;;  %v457_v25 = vmul.f32 2.0, %v2266_v19  ;;  %v441_v19 = vmul.f32 2.0, %v2783_v63 }
 0x13d   :  { %542 = vmin.xlane.f32.xlu0 %v2803_v18 }
 0x13e   :  { %v2821_v30 = vsub.f32 %v2778_v59, %v457_v25 }
 0x13f   :  { %v2269_v23 = vpop.f32.mrb[20].mxu0 }
 0x140   :  { %v2811_v24 = vpop.f32.mrb[21].mxu0  ;;  %v459_v41 = vmul.f32 2.0, %v2269_v23  ;;  %v2907_v23 = vsub.f32 %v2778_v59, %v441_v19 }
 0x141   :  { %514 = vmin.xlane.f32.xlu0 %v2809_v22  ;;  %v458_v63 = vmul.f32 2.0, %v2811_v24 }
 0x142   :  { %v2845_v46 = vsub.f32 %v2778_v59, %v459_v41 }
 0x143   :  { %v2272_v27 = vpop.f32.mrb[22].mxu0  ;;  %v2922_v29 = vsub.f32 %v2778_v59, %v458_v63 }
 0x144   :  { %v2817_v28 = vpop.f32.mrb[23].mxu0  ;;  %v461_v49 = vmul.f32 2.0, %v2272_v27  ;;  %v2917_v27 = vsub.f32 %v2778_v59, %v443_v14 }
 0x145   :  { %518 = vmin.xlane.f32.xlu0 %v2815_v26 }
 0x146   :  { %v2857_v52 = vsub.f32 %v2778_v59, %v461_v49 }
 0x147   :  { %v2823_v31 = vpop.f32.mrb[24].mxu0 }
 0x148   :  { %v399_v32 = vpop.f32.mrb[25].mxu0 }
 0x149   :  { %548 = vmin.xlane.f32.xlu0 %v2821_v30  ;;  %v462_v53 = vmul.f32 2.0, %v399_v32 }
 0x14b   :  { %v2829_v35 = vpop.f32.mrb[26].mxu0  ;;  %v2865_v56 = vsub.f32 %v2778_v59, %v462_v53 }
 0x14c   :  { %v409_v36 = vpop.f32.mrb[27].mxu0 }
 0x14d   :  { %522 = vmin.xlane.f32.xlu0 %v2827_v34  ;;  %v464_v55 = vmul.f32 2.0, %v409_v36 }
 0x14f   :  { %v2835_v39 = vpop.f32.mrb[28].mxu0  ;;  %v2869_v58 = vsub.f32 %v2778_v59, %v464_v55 }
 0x150   :  { %v419_v40 = vpop.f32.mrb[29].mxu0 }
 0x151   :  { %524 = vmin.xlane.f32.xlu0 %v2833_v38  ;;  %v466_v57 = vmul.f32 2.0, %v419_v40 }
 0x153   :  { %v2841_v43 = vpop.f32.mrb[30].mxu0  ;;  %v2873_v61 = vsub.f32 %v2778_v59, %v466_v57 }
 0x154   :  { %v429_v44 = vpop.f32.mrb[31].mxu0 }
 0x155   :  { %526 = vmin.xlane.f32.xlu0 %v2839_v42  ;;  %v468_v60 = vmul.f32 2.0, %v429_v44 }
 0x157   :  { %v2877_v0 = vsub.f32 %v2778_v59, %v468_v60 }
 0x159   :  { %552 = vmin.xlane.f32.xlu0 %v2845_v46 }
 0x15d   :  { %530 = vmin.xlane.f32.xlu0 %v2849_v48 }
 0x161   :  { %534 = vmin.xlane.f32.xlu0 %v2853_v50 }
 0x165   :  { %556 = vmin.xlane.f32.xlu0 %v2857_v52 }
 0x169   :  { %538 = vmin.xlane.f32.xlu0 %v2861_v54 }
 0x16d   :  { %558 = vmin.xlane.f32.xlu0 %v2865_v56 }
 0x171   :  { %562 = vmin.xlane.f32.xlu0 %v2869_v58 }
 0x175   :  { %566 = vmin.xlane.f32.xlu0 %v2873_v61 }
 0x179   :  { %570 = vmin.xlane.f32.xlu0 %v2877_v0 }
 0x1aa   :  { %v511_v5 = vpop.xlane.xlu0 %510 }
 0x1ab   :  { %vm574_vm2 = vcmp.eq.f32.partialorder %v2781_v62, %v511_v5 }
 0x1ac   :  { %v2885_v7 = vsel %vm574_vm2, %v2881_v4, 128 }
 0x1ad   :  { %v639_v9 = vshra.s32 %v2885_v7, 16 }
 0x1ae   :  { %v513_v11 = vpop.xlane.xlu0 %512 }
 0x1af   :  { %vm575_vm3 = vcmp.eq.f32.partialorder %v2787_v1, %v513_v11  ;;  %v2889_v13 = vcvt.s32.f32 %v639_v9  ;;  %v456_v1 = vmul.f32 2.0, %v2805_v20  ;;  %v447_v20 = vmul.f32 2.0, %v2792_v6 }
 0x1b0   :  { %v2892_v15 = vsel %vm575_vm3, %v2881_v4, 128 }
 0x1b1   :  { %642 = vmin.xlane.f32.xlu1 %v2889_v13  ;;  %v653_v17 = vshra.s32 %v2892_v15, 16  ;;  %v2912_v25 = vsub.f32 %v2778_v59, %v456_v1  ;;  %v2926_v2 = vsub.f32 %v2778_v59, %v447_v20 }
 0x1b3   :  { %v2897_v62 = vcvt.s32.f32 %v653_v17 }
 0x1b5   :  { %656 = vmin.xlane.f32.xlu1 %v2897_v62 }
 0x1b9   :  { %544 = vmin.xlane.f32.xlu1 %v2902_v21 }
 0x1bd   :  { %516 = vmin.xlane.f32.xlu1 %v2907_v23 }
 0x1c1   :  { %546 = vmin.xlane.f32.xlu1 %v2912_v25 }
 0x1c5   :  { %520 = vmin.xlane.f32.xlu1 %v2917_v27 }
 0x1c9   :  { %550 = vmin.xlane.f32.xlu1 %v2922_v29 }
 0x1ca   :  { %v543_v32 = vpop.xlane.xlu0 %542 }
 0x1cb   :  { %vm590_vm4 = vcmp.eq.f32.partialorder %v2803_v18, %v543_v32 }
 0x1cc   :  { %v2930_v24 = vsel %vm590_vm4, %v2881_v4, 128 }
 0x1cd   :  { %528 = vmin.xlane.f32.xlu1 %v2926_v2  ;;  %v863_v6 = vshra.s32 %v2930_v24, 16 }
 0x1ce   :  { %v515_v33 = vpop.xlane.xlu0 %514 }
 0x1cf   :  { %vm576_vm5 = vcmp.eq.f32.partialorder %v2809_v22, %v515_v33  ;;  %v2935_v36 = vcvt.s32.f32 %v863_v6 }
 0x1d0   :  { %v2938_v37 = vsel %vm576_vm5, %v2881_v4, 128 }
 0x1d1   :  { %866 = vmin.xlane.f32.xlu0 %v2935_v36  ;;  %v667_v40 = vshra.s32 %v2938_v37, 16 }
 0x1d2   :  { %v519_v18 = vpop.xlane.xlu0 %518 }
 0x1d3   :  { %vm578_vm6 = vcmp.eq.f32.partialorder %v2815_v26, %v519_v18  ;;  %v2943_v41 = vcvt.s32.f32 %v667_v40 }
 0x1d4   :  { %v2946_v44 = vsel %vm578_vm6, %v2881_v4, 128 }
 0x1d5   :  { %670 = vmin.xlane.f32.xlu0 %v2943_v41  ;;  %v695_v22 = vshra.s32 %v2946_v44, 16 }
 0x1d6   :  { %v549_v45 = vpop.xlane.xlu0 %548 }
 0x1d7   :  { %vm593_vm7 = vcmp.eq.f32.partialorder %v2821_v30, %v549_v45  ;;  %v2951_v47 = vcvt.s32.f32 %v695_v22 }
 0x1d8   :  { %v2954_v49 = vsel %vm593_vm7, %v2881_v4, 128 }
 0x1d9   :  { %698 = vmin.xlane.f32.xlu0 %v2951_v47  ;;  %v905_v26 = vshra.s32 %v2954_v49, 16 }
 0x1da   :  { %v523_v51 = vpop.xlane.xlu0 %522 }
 0x1db   :  { %vm580_vm8 = vcmp.eq.f32.partialorder %v2827_v34, %v523_v51  ;;  %v2959_v53 = vcvt.s32.f32 %v905_v26 }
 0x1dc   :  { %v2962_v55 = vsel %vm580_vm8, %v2881_v4, 128 }
 0x1dd   :  { %908 = vmin.xlane.f32.xlu0 %v2959_v53  ;;  %v723_v30 = vshra.s32 %v2962_v55, 16 }
 0x1de   :  { %v2966_v57 = vpop.xlane.xlu0 %524 }
 0x1df   :  { %v2968_v60 = vcvt.s32.f32 %v723_v30 }
 0x1e1   :  { %726 = vmin.xlane.f32.xlu0 %v2968_v60 }
 0x1e2   :  { %v527_v5 = vpop.xlane.xlu0 %526 }
 0x1e3   :  { %vm582_vm9 = vcmp.eq.f32.partialorder %v2839_v42, %v527_v5 }
 0x1e4   :  { %v2973_v34 = vsel %vm582_vm9, %v2881_v4, 128 }
 0x1e5   :  { %v751_v9 = vshra.s32 %v2973_v34, 16 }
 0x1e6   :  { %v553_v11 = vpop.xlane.xlu0 %552 }
 0x1e7   :  { %vm595_vm10 = vcmp.eq.f32.partialorder %v2845_v46, %v553_v11  ;;  %v2977_v16 = vcvt.s32.f32 %v751_v9 }
 0x1e8   :  { %v2980_v17 = vsel %vm595_vm10, %v2881_v4, 128 }
 0x1e9   :  { %754 = vmin.xlane.f32.xlu0 %v2977_v16  ;;  %v933_v19 = vshra.s32 %v2980_v17, 16 }
 0x1ea   :  { %v531_v1 = vpop.xlane.xlu0 %530 }
 0x1eb   :  { %vm584_vm11 = vcmp.eq.f32.partialorder %v2849_v48, %v531_v1  ;;  %v2985_v42 = vcvt.s32.f32 %v933_v19 }
 0x1ec   :  { %v2988_v14 = vsel %vm584_vm11, %v2881_v4, 128 }
 0x1ed   :  { %936 = vmin.xlane.f32.xlu0 %v2985_v42  ;;  %v779_v46 = vshra.s32 %v2988_v14, 16 }
 0x1ee   :  { %v535_v63 = vpop.xlane.xlu0 %534 }
 0x1ef   :  { %vm586_vm12 = vcmp.eq.f32.partialorder %v2853_v50, %v535_v63  ;;  %v2993_v20 = vcvt.s32.f32 %v779_v46 }
 0x1f0   :  { %v2996_v32 = vsel %vm586_vm12, %v2881_v4, 128 }
 0x1f1   :  { %782 = vmin.xlane.f32.xlu0 %v2993_v20  ;;  %v807_v48 = vshra.s32 %v2996_v32, 16 }
 0x1f2   :  { %v557_v6 = vpop.xlane.xlu0 %556 }
 0x1f3   :  { %vm597_vm13 = vcmp.eq.f32.partialorder %v2857_v52, %v557_v6  ;;  %v3001_v33 = vcvt.s32.f32 %v807_v48 }
 0x1f4   :  { %v3004_v40 = vsel %vm597_vm13, %v2881_v4, 128  ;;  %vm581_vm13 = vcmp.eq.f32.partialorder %v2833_v38, %v2966_v57  ;;  %v904_v38 = vand.u32 65535, %v2954_v49  ;;  %v778_v49 = vand.u32 65535, %v2988_v14 }
 0x1f5   :  { %810 = vmin.xlane.f32.xlu0 %v3001_v33  ;;  %v961_v50 = vshra.s32 %v3004_v40, 16 }
 0x1f6   :  { %v539_v18 = vpop.xlane.xlu0 %538 }
 0x1f7   :  { %vm588_vm14 = vcmp.eq.f32.partialorder %v2861_v54, %v539_v18  ;;  %v3009_v22 = vcvt.s32.f32 %v961_v50  ;;  %v652_v18 = vand.u32 65535, %v2892_v15  ;;  %v460_v15 = vmul.f32 2.0, %v2817_v28 }
 0x1f8   :  { %v3012_v45 = vsel %vm588_vm14, %v2881_v4, 128  ;;  %v463_v28 = vmul.f32 2.0, %v2823_v31  ;;  %v666_v31 = vand.u32 65535, %v2938_v37 }
 0x1f9   :  { %964 = vmin.xlane.f32.xlu0 %v3009_v22  ;;  %v835_v52 = vshra.s32 %v3012_v45, 16 }
 0x1fa   :  { %v559_v26 = vpop.xlane.xlu0 %558 }
 0x1fb   :  { %vm598_vm15 = vcmp.eq.f32.partialorder %v2865_v56, %v559_v26  ;;  %v3017_v51 = vcvt.s32.f32 %v835_v52 }
 0x1fc   :  { %v3020_v30 = vsel %vm598_vm15, %v2881_v4, 128 }
 0x1fd   :  { %838 = vmin.xlane.f32.xlu0 %v3017_v51  ;;  %v975_v54 = vshra.s32 %v3020_v30, 16 }
 0x1fe   :  { %v563_v5 = vpop.xlane.xlu0 %562 }
 0x1ff   :  { %vm600_vm1 = vcmp.eq.f32.partialorder %v2869_v58, %v563_v5  ;;  %v3025_v9 = vcvt.s32.f32 %v975_v54  ;;  %v638_v54 = vand.u32 65535, %v2885_v7  ;;  %v3068_v7 = vsub.f32 %v2778_v59, %v460_v15 }
 0x200   :  { %v3028_v11 = vsel %vm600_vm1, %v2881_v4, 128  ;;  %v668_v15 = vcvt.s32.f32 %v666_v31 }
 0x201   :  { %978 = vmin.xlane.f32.xlu0 %v3025_v9  ;;  %v1003_v56 = vshra.s32 %v3028_v11, 16 }
 0x202   :  { %v567_v19 = vpop.xlane.xlu0 %566 }
 0x203   :  { %vm602_vm2 = vcmp.eq.f32.partialorder %v2873_v61, %v567_v19  ;;  %v3033_v1 = vcvt.s32.f32 %v1003_v56  ;;  %v640_v56 = vcvt.s32.f32 %v638_v54  ;;  %v449_v19 = vmul.f32 2.0, %v2794_v8 }
 0x204   :  { %v3036_v46 = vsel %vm602_vm2, %v2881_v4, 128 }
 0x205   :  { %1006 = vmin.xlane.f32.xlu0 %v3033_v1  ;;  %v1031_v58 = vshra.s32 %v3036_v46, 16 }
 0x206   :  { %v571_v63 = vpop.xlane.xlu0 %570 }
 0x207   :  { %vm604_vm3 = vcmp.eq.f32.partialorder %v2877_v0, %v571_v63  ;;  %v3041_v48 = vcvt.s32.f32 %v1031_v58  ;;  %v654_v0 = vcvt.s32.f32 %v652_v18  ;;  %v3064_v63 = vsub.f32 %v2778_v59, %v449_v19 }
 0x208   :  { %v3044_v6 = vsel %vm604_vm3, %v2881_v4, 128  ;;  %v469_v19 = vmul.f32 2.0, %v2841_v43 }
 0x209   :  { %1034 = vmin.xlane.f32.xlu0 %v3041_v48  ;;  %v1059_v61 = vshra.s32 %v3044_v6, 16 }
 0x20b   :  { %v3048_v50 = vcvt.s32.f32 %v1059_v61 }
 0x20d   :  { %1062 = vmin.xlane.f32.xlu0 %v3048_v50 }
 0x23e   :  { %v3052_v52 = vpop.xlane.xlu1 %642 }
 0x23f   :  { %vm644_vm5 = vcmp.eq.f32.partialorder %v2889_v13, %v3052_v52  ;;  %v453_v13 = vmul.f32 2.0, %v2798_v12  ;;  %v467_v12 = vmul.f32 2.0, %v2835_v39  ;;  %v694_v39 = vand.u32 65535, %v2946_v44 }
 0x240   :  { %v645_v58 = vsel %vm644_vm5, %v640_v56, inf }
 0x241   :  { %v3079_v61 = vsub.f32 %v2778_v59, %v453_v13  ;;  %v696_v13 = vcvt.s32.f32 %v694_v39 }
 0x242   :  { %v3054_v26 = vpop.xlane.xlu1 %656 }
 0x243   :  { %vm658_vm4 = vcmp.eq.f32.partialorder %v2897_v62, %v3054_v26  ;;  %v451_v62 = vmul.f32 2.0, %v2796_v10  ;;  %v3084_v10 = vsub.f32 %v2778_v59, %v463_v28 }
 0x244   :  { %v659_v5 = vsel %vm658_vm4, %v654_v0, inf  ;;  %v465_v0 = vmul.f32 2.0, %v2829_v35  ;;  %v3098_v35 = vsub.f32 %v2778_v59, %v467_v12 }
 0x245   :  { %660 = vmin.xlane.f32.xlu1 %v659_v5  ;;  %v3074_v8 = vsub.f32 %v2778_v59, %v451_v62 }
 0x246   :  { %v545_v18 = vpop.xlane.xlu1 %544  ;;  %v3089_v54 = vsub.f32 %v2778_v59, %v465_v0 }
 0x247   :  { %vm591_vm6 = vcmp.eq.f32.partialorder %v2902_v21, %v545_v18  ;;  %v3111_v21 = vsub.f32 %v2778_v59, %v469_v19  ;;  %v722_v59 = vand.u32 65535, %v2962_v55 }
 0x248   :  { %v3106_v37 = vsel %vm591_vm6, %v2881_v4, 128 }
 0x249   :  { %646 = vmin.xlane.f32.xlu1 %v645_v58  ;;  %v724_v19 = vcvt.s32.f32 %v722_v59 }
 0x24a   :  { %v517_v5 = vpop.xlane.xlu1 %516 }
 0x24b   :  { %vm577_vm8 = vcmp.eq.f32.partialorder %v2907_v23, %v517_v5 }
 0x24c   :  { %v3119_v28 = vsel %vm577_vm8, %v2881_v4, 128 }
 0x24d   :  { %532 = vmin.xlane.f32.xlu1 %v3064_v63 }
 0x24e   :  { %v547_v62 = vpop.xlane.xlu1 %546 }
 0x24f   :  { %vm592_vm10 = vcmp.eq.f32.partialorder %v2912_v25, %v547_v62  ;;  %v862_v25 = vand.u32 65535, %v2930_v24 }
 0x250   :  { %v3130_v31 = vsel %vm592_vm10, %v2881_v4, 128 }
 0x251   :  { %554 = vmin.xlane.f32.xlu1 %v3068_v7  ;;  %v891_v39 = vshra.s32 %v3130_v31, 16  ;;  %v864_v24 = vcvt.s32.f32 %v862_v25 }
 0x252   :  { %v521_v23 = vpop.xlane.xlu1 %520 }
 0x253   :  { %vm579_vm11 = vcmp.eq.f32.partialorder %v2917_v27, %v521_v23  ;;  %v750_v27 = vand.u32 65535, %v2973_v34 }
 0x255   :  { %536 = vmin.xlane.f32.xlu1 %v3074_v8  ;;  %v752_v34 = vcvt.s32.f32 %v750_v27 }
 0x256   :  { %v551_v62 = vpop.xlane.xlu1 %550 }
 0x257   :  { %vm594_vm15 = vcmp.eq.f32.partialorder %v2922_v29, %v551_v62 }
 0x259   :  { %540 = vmin.xlane.f32.xlu1 %v3079_v61 }
 0x25a   :  { %v529_v57 = vpop.xlane.xlu1 %528 }
 0x25b   :  { %vm583_vm2 = vcmp.eq.f32.partialorder %v2926_v2, %v529_v57  ;;  %v932_v2 = vand.u32 65535, %v2980_v17 }
 0x25c   :  { %v3181_v62 = vsel %vm583_vm2, %v2881_v4, 128 }
 0x25d   :  { %560 = vmin.xlane.f32.xlu1 %v3084_v10 }
 0x25e   :  { %v3092_v56 = vpop.xlane.xlu0 %866 }
 0x25f   :  { %vm868_vm14 = vcmp.eq.f32.partialorder %v2935_v36, %v3092_v56 }
 0x261   :  { %564 = vmin.xlane.f32.xlu1 %v3089_v54 }
 0x262   :  { %v3101_v58 = vpop.xlane.xlu0 %670 }
 0x263   :  { %vm672_vm7 = vcmp.eq.f32.partialorder %v2943_v41, %v3101_v58  ;;  %v877_v41 = vshra.s32 %v3106_v37, 16 }
 0x264   :  { %v673_v43 = vsel %vm672_vm7, %v668_v15, inf  ;;  %v3143_v15 = vsel %vm579_vm11, %v2881_v4, 128 }
 0x265   :  { %568 = vmin.xlane.f32.xlu1 %v3098_v35  ;;  %674 = vmin.xlane.f32.xlu0 %v673_v43  ;;  %v3126_v12 = vcvt.s32.f32 %v877_v41  ;;  %v3155_v41 = vsel %vm581_vm13, %v2881_v4, 128 }
 0x266   :  { %v3113_v44 = vpop.xlane.xlu0 %698  ;;  %v737_v23 = vshra.s32 %v3155_v41, 16 }
 0x267   :  { %vm700_vm9 = vcmp.eq.f32.partialorder %v2951_v47, %v3113_v44  ;;  %v681_v47 = vshra.s32 %v3119_v28, 16 }
 0x268   :  { %v701_v18 = vsel %vm700_vm9, %v696_v13, inf  ;;  %v709_v13 = vshra.s32 %v3143_v15, 16 }
 0x269   :  { %572 = vmin.xlane.f32.xlu1 %v3111_v21  ;;  %702 = vmin.xlane.f32.xlu0 %v701_v18  ;;  %v3137_v55 = vcvt.s32.f32 %v681_v47  ;;  %v869_v18 = vsel %vm868_vm14, %v864_v24, inf  ;;  %v3168_v47 = vsel %vm594_vm15, %v2881_v4, 128  ;;  %v765_v24 = vshra.s32 %v3181_v62, 16 }
 0x26a   :  { %v3124_v0 = vpop.xlane.xlu0 %908  ;;  %v3162_v59 = vcvt.s32.f32 %v709_v13 }
 0x26b   :  { %vm910_vm3 = vcmp.eq.f32.partialorder %v2959_v53, %v3124_v0  ;;  %v780_v53 = vcvt.s32.f32 %v778_v49  ;;  %v3198_v57 = vcvt.s32.f32 %v765_v24 }
 0x26d   :  { %880 = vmin.xlane.f32.xlu1 %v3126_v12 }
 0x26e   :  { %v3135_v5 = vpop.xlane.xlu0 %726 }
 0x26f   :  { %vm728_vm12 = vcmp.eq.f32.partialorder %v2968_v60, %v3135_v5  ;;  %v3151_v60 = vcvt.s32.f32 %v891_v39  ;;  %v919_v39 = vshra.s32 %v3168_v47, 16 }
 0x270   :  { %v729_v43 = vsel %vm728_vm12, %v724_v19, inf  ;;  %v906_v19 = vcvt.s32.f32 %v904_v38  ;;  %v934_v38 = vcvt.s32.f32 %v932_v2 }
 0x271   :  { %684 = vmin.xlane.f32.xlu1 %v3137_v55  ;;  %730 = vmin.xlane.f32.xlu0 %v729_v43  ;;  %v3187_v14 = vcvt.s32.f32 %v919_v39 }
 0x272   :  { %v911_v43 = vsel %vm910_vm3, %v906_v19, inf }
 0x275   :  { %894 = vmin.xlane.f32.xlu1 %v3151_v60  ;;  %870 = vmin.xlane.f32.xlu0 %v869_v18  ;;  %v806_v18 = vand.u32 65535, %v2996_v32  ;;  %v834_v32 = vand.u32 65535, %v3012_v45 }
 0x276   :  { %v3160_v36 = vpop.xlane.xlu0 %754 }
 0x277   :  { %vm756_vm1 = vcmp.eq.f32.partialorder %v2977_v16, %v3160_v36  ;;  %v3177_v16 = vcvt.s32.f32 %v737_v23 }
 0x278   :  { %v757_v29 = vsel %vm756_vm1, %v752_v34, inf }
 0x279   :  { %712 = vmin.xlane.f32.xlu1 %v3162_v59  ;;  %758 = vmin.xlane.f32.xlu0 %v757_v29  ;;  %v808_v29 = vcvt.s32.f32 %v806_v18 }
 0x27a   :  { %v3175_v25 = vpop.xlane.xlu0 %936 }
 0x27b   :  { %vm938_vm5 = vcmp.eq.f32.partialorder %v2985_v42, %v3175_v25 }
 0x27c   :  { %v939_v34 = vsel %vm938_vm5, %v934_v38, inf }
 0x27d   :  { %740 = vmin.xlane.f32.xlu1 %v3177_v16  ;;  %912 = vmin.xlane.f32.xlu0 %v911_v43  ;;  %v836_v43 = vcvt.s32.f32 %v834_v32 }
 0x27e   :  { %v3185_v27 = vpop.xlane.xlu0 %782 }
 0x27f   :  { %vm784_vm4 = vcmp.eq.f32.partialorder %v2993_v20, %v3185_v27  ;;  %v960_v20 = vand.u32 65535, %v3004_v40 }
 0x280   :  { %v785_v13 = vsel %vm784_vm4, %v780_v53, inf }
 0x281   :  { %922 = vmin.xlane.f32.xlu1 %v3187_v14  ;;  %786 = vmin.xlane.f32.xlu0 %v785_v13  ;;  %v962_v19 = vcvt.s32.f32 %v960_v20  ;;  %v663_v20 = vcvt.f32.s32 %v3054_v26  ;;  %v2526_v26 = vmov 1.0  }
 0x282   :  { %v3196_v17 = vpop.xlane.xlu0 %810 }
 0x283   :  { %vm812_vm6 = vcmp.eq.f32.partialorder %v3001_v33, %v3196_v17  ;;  %v974_v33 = vand.u32 65535, %v3020_v30 }
 0x284   :  { %v813_v42 = vsel %vm812_vm6, %v808_v29, inf }
 0x285   :  { %768 = vmin.xlane.f32.xlu1 %v3198_v57  ;;  %940 = vmin.xlane.f32.xlu0 %v939_v34  ;;  %v976_v53 = vcvt.s32.f32 %v974_v33 }
 0x286   :  { %v3204_v23 = vpop.xlane.xlu0 %964 }
 0x287   :  { %vm966_vm7 = vcmp.eq.f32.partialorder %v3009_v22, %v3204_v23  ;;  %v1002_v22 = vand.u32 65535, %v3028_v11 }
 0x288   :  { %v967_v39 = vsel %vm966_vm7, %v962_v19, inf }
 0x289   :  { %814 = vmin.xlane.f32.xlu0 %v813_v42  ;;  %v1004_v13 = vcvt.s32.f32 %v1002_v22  ;;  %v649_v42 = vcvt.f32.s32 %v3052_v52 }
 0x28a   :  { %v3209_v49 = vpop.xlane.xlu0 %838 }
 0x28b   :  { %vm840_vm8 = vcmp.eq.f32.partialorder %v3017_v51, %v3209_v49  ;;  %v1030_v51 = vand.u32 65535, %v3036_v46 }
 0x28c   :  { %v841_v2 = vsel %vm840_vm8, %v836_v43, inf }
 0x28d   :  { %968 = vmin.xlane.f32.xlu0 %v967_v39  ;;  %v1032_v38 = vcvt.s32.f32 %v1030_v51 }
 0x28e   :  { %v3214_v40 = vpop.xlane.xlu0 %978 }
 0x28f   :  { %vm980_vm9 = vcmp.eq.f32.partialorder %v3025_v9, %v3214_v40  ;;  %v1058_v9 = vand.u32 65535, %v3044_v6  ;;  %v650_v6 = vshll.u32 %v649_v42, 16 }
 0x290   :  { %v981_v24 = vsel %vm980_vm9, %v976_v53, inf }
 0x291   :  { %842 = vmin.xlane.f32.xlu0 %v841_v2 }
 0x292   :  { %v3219_v45 = vpop.xlane.xlu0 %1006 }
 0x293   :  { %vm1008_vm10 = vcmp.eq.f32.partialorder %v3033_v1, %v3219_v45  ;;  %v1060_v1 = vcvt.s32.f32 %v1058_v9 }
 0x294   :  { %v1009_v18 = vsel %vm1008_vm10, %v1004_v13, inf }
 0x295   :  { %982 = vmin.xlane.f32.xlu0 %v981_v24 }
 0x296   :  { %v3224_v30 = vpop.xlane.xlu0 %1034 }
 0x297   :  { %vm1036_vm11 = vcmp.eq.f32.partialorder %v3041_v48, %v3224_v30  ;;  %v664_v48 = vshll.u32 %v663_v20, 16 }
 0x298   :  { %v1037_v34 = vsel %vm1036_vm11, %v1032_v38, inf }
 0x299   :  { %1010 = vmin.xlane.f32.xlu0 %v1009_v18 }
 0x29a   :  { %v3229_v11 = vpop.xlane.xlu0 %1062 }
 0x29b   :  { %vm1064_vm12 = vcmp.eq.f32.partialorder %v3048_v50, %v3229_v11 }
 0x29c   :  { %v1065_v46 = vsel %vm1064_vm12, %v1060_v1, inf }
 0x29d   :  { %1038 = vmin.xlane.f32.xlu0 %v1037_v34 }
 0x2a1   :  { %1066 = vmin.xlane.f32.xlu0 %v1065_v46 }
 0x2d2   :  { %v661_v29 = vpop.xlane.xlu1 %660 }
 0x2d3   :  { %v662_v32 = vcvt.f32.s32 %v661_v29 }
 0x2d5   :  { %v665_v39 = vadd.s32 %v664_v48, %v662_v32  ;;  %v677_v32 = vcvt.f32.s32 %v3101_v58 }
 0x2d6   :  { %v647_v19 = vpop.xlane.xlu1 %646 }
 0x2d7   :  { %v648_v33 = vcvt.f32.s32 %v647_v19  ;;  %vm1087_vm15 = vcmp.eq.s32.totalorder %v2881_v4, %v665_v39 }
 0x2d9   :  { %v651_v43 = vadd.s32 %v650_v6, %v648_v33  ;;  %v678_v33 = vshll.u32 %v677_v32, 16 }
 0x2da   :  { %v533_v2 = vpop.xlane.xlu1 %532 }
 0x2db   :  { %vm585_vm13 = vcmp.eq.f32.partialorder %v3064_v63, %v533_v2  ;;  %vm1086_vm14 = vcmp.eq.s32.totalorder %v2881_v4, %v651_v43 }
 0x2dc   :  { %v3239_v50 = vsel %vm585_vm13, %v2881_v4, 128  ;;  %2317 = vmatprep.mubr.msk.f32.mxu1 %vm1086_vm14, %v2526_v26  ;;  %vm3242_vm1 = vmpackc.low %vm1087_vm15, %vm1086_vm14 }
 0x2dd   :  { %2318 = vmatmul.mubr.msk.f32.vlgmr.msra.gmra.mrb[0].mxu1 %vm1087_vm15, %v2526_v26  ;;  %v793_v22 = vshra.s32 %v3239_v50, 16 }
 0x2de   :  { %v555_v53 = vpop.xlane.xlu1 %554 }
 0x2df   :  { %vm596_vm2 = vcmp.eq.f32.partialorder %v3068_v7, %v555_v53  ;;  %v3249_v63 = vcvt.s32.f32 %v793_v22 }
 0x2e0   :  { %v3252_v24 = vsel %vm596_vm2, %v2881_v4, 128 }
 0x2e1   :  { %796 = vmin.xlane.f32.xlu1 %v3249_v63  ;;  %v947_v51 = vshra.s32 %v3252_v24, 16 }
 0x2e2   :  { %v537_v13 = vpop.xlane.xlu1 %536 }
 0x2e3   :  { %vm587_vm3 = vcmp.eq.f32.partialorder %v3074_v8, %v537_v13  ;;  %v3257_v18 = vcvt.s32.f32 %v947_v51 }
 0x2e4   :  { %v3260_v9 = vsel %vm587_vm3, %v2881_v4, 128 }
 0x2e5   :  { %950 = vmin.xlane.f32.xlu1 %v3257_v18  ;;  %v821_v7 = vshra.s32 %v3260_v9, 16 }
 0x2e6   :  { %v541_v38 = vpop.xlane.xlu1 %540 }
 0x2e7   :  { %vm589_vm4 = vcmp.eq.f32.partialorder %v3079_v61, %v541_v38  ;;  %v3265_v34 = vcvt.s32.f32 %v821_v7  ;;  %v680_v7 = vand.u32 65535, %v3119_v28  ;;  %v736_v28 = vand.u32 65535, %v3155_v41 }
 0x2e8   :  { %v3268_v1 = vsel %vm589_vm4, %v2881_v4, 128  ;;  %v764_v41 = vand.u32 65535, %v3181_v62 }
 0x2e9   :  { %824 = vmin.xlane.f32.xlu1 %v3265_v34  ;;  %v849_v8 = vshra.s32 %v3268_v1, 16 }
 0x2ea   :  { %v561_v46 = vpop.xlane.xlu1 %560 }
 0x2eb   :  { %vm599_vm5 = vcmp.eq.f32.partialorder %v3084_v10, %v561_v46  ;;  %v3273_v20 = vcvt.s32.f32 %v849_v8  ;;  %v682_v46 = vcvt.s32.f32 %v680_v7  ;;  %v890_v7 = vand.u32 65535, %v3130_v31 }
 0x2ec   :  { %v3276_v29 = vsel %vm599_vm5, %v2881_v4, 128 }
 0x2ed   :  { %852 = vmin.xlane.f32.xlu1 %v3273_v20  ;;  %v989_v61 = vshra.s32 %v3276_v29, 16  ;;  %v892_v62 = vcvt.s32.f32 %v890_v7 }
 0x2ee   :  { %v565_v42 = vpop.xlane.xlu1 %564 }
 0x2ef   :  { %vm601_vm6 = vcmp.eq.f32.partialorder %v3089_v54, %v565_v42  ;;  %v3282_v48 = vcvt.s32.f32 %v989_v61  ;;  %v708_v42 = vand.u32 65535, %v3143_v15 }
 0x2f0   :  { %v3285_v19 = vsel %vm601_vm6, %v2881_v4, 128 }
 0x2f1   :  { %992 = vmin.xlane.f32.xlu1 %v3282_v48  ;;  %v1017_v10 = vshra.s32 %v3285_v19, 16 }
 0x2f2   :  { %v569_v6 = vpop.xlane.xlu1 %568  ;;  %v675_v39 = vpop.xlane.xlu0 %674 }
 0x2f3   :  { %vm603_vm7 = vcmp.eq.f32.partialorder %v3098_v35, %v569_v6  ;;  %v676_v43 = vcvt.f32.s32 %v675_v39  ;;  %v3290_v2 = vcvt.s32.f32 %v1017_v10  ;;  %v710_v6 = vcvt.s32.f32 %v708_v42 }
 0x2f4   :  { %v3293_v58 = vsel %vm603_vm7, %v2881_v4, 128 }
 0x2f5   :  { %v3295_v54 = vadd.s32 %v678_v33, %v676_v43  ;;  %1020 = vmin.xlane.f32.xlu1 %v3290_v2  ;;  %v1045_v22 = vshra.s32 %v3293_v58, 16  ;;  %v876_v33 = vand.u32 65535, %v3106_v37 }
 0x2f6   :  { %v573_v53 = vpop.xlane.xlu1 %572 }
 0x2f7   :  { %vm605_vm8 = vcmp.eq.f32.partialorder %v3111_v21, %v573_v53  ;;  %vm1088_vm9 = vcmp.eq.s32.totalorder %v2881_v4, %v3295_v54  ;;  %v3302_v51 = vcvt.s32.f32 %v1045_v22  ;;  %v738_v22 = vcvt.s32.f32 %v736_v28 }
 0x2f8   :  { %v3305_v35 = vsel %vm605_vm8, %v2881_v4, 128  ;;  %2320 = vmatprep.mubr.msk.f32.mxu1 %vm1088_vm9, %v2526_v26  ;;  %v878_v53 = vcvt.s32.f32 %v876_v33 }
 0x2f9   :  { %1048 = vmin.xlane.f32.xlu1 %v3302_v51  ;;  %v1073_v13 = vshra.s32 %v3305_v35, 16 }
 0x2fa   :  { %v3314_v21 = vpop.xlane.xlu1 %880 }
 0x2fb   :  { %v3316_v38 = vcvt.s32.f32 %v1073_v13  ;;  %vm882_vm13 = vcmp.eq.f32.partialorder %v3126_v12, %v3314_v21 }
 0x2fc   :  { %v883_v37 = vsel %vm882_vm13, %v878_v53, inf  ;;  %v703_v53 = vpop.xlane.xlu0 %702 }
 0x2fd   :  { %1076 = vmin.xlane.f32.xlu1 %v3316_v38 }
 0x2fe   :  { %v3319_v8 = vpop.xlane.xlu1 %684 }
 0x2ff   :  { %vm686_vm10 = vcmp.eq.f32.partialorder %v3137_v55, %v3319_v8  ;;  %v918_v55 = vand.u32 65535, %v3168_v47 }
 0x300   :  { %v687_v61 = vsel %vm686_vm10, %v682_v46, inf  ;;  %v766_v46 = vcvt.s32.f32 %v764_v41 }
 0x301   :  { %688 = vmin.xlane.f32.xlu1 %v687_v61  ;;  %v920_v13 = vcvt.s32.f32 %v918_v55 }
 0x302   :  { %v3324_v32 = vpop.xlane.xlu1 %894 }
 0x303   :  { %vm896_vm2 = vcmp.eq.f32.partialorder %v3151_v60, %v3324_v32  ;;  %v946_v60 = vand.u32 65535, %v3252_v24  ;;  %v988_v24 = vand.u32 65535, %v3276_v29 }
 0x304   :  { %v897_v61 = vsel %vm896_vm2, %v892_v62, inf }
 0x306   :  { %v3327_v10 = vpop.xlane.xlu1 %712 }
 0x307   :  { %vm714_vm11 = vcmp.eq.f32.partialorder %v3162_v59, %v3327_v10 }
 0x308   :  { %v715_v39 = vsel %vm714_vm11, %v710_v6, inf }
 0x309   :  { %716 = vmin.xlane.f32.xlu1 %v715_v39 }
 0x30a   :  { %v3333_v43 = vpop.xlane.xlu1 %740 }
 0x30b   :  { %vm742_vm12 = vcmp.eq.f32.partialorder %v3177_v16, %v3333_v43 }
 0x30c   :  { %v743_v15 = vsel %vm742_vm12, %v738_v22, inf }
 0x30d   :  { %744 = vmin.xlane.f32.xlu1 %v743_v15 }
 0x30e   :  { %v3340_v59 = vpop.xlane.xlu1 %922 }
 0x30f   :  { %vm924_vm14 = vcmp.eq.f32.partialorder %v3187_v14, %v3340_v59  ;;  %v792_v14 = vand.u32 65535, %v3239_v50 }
 0x310   :  { %v925_v47 = vsel %vm924_vm14, %v920_v13, inf  ;;  %v990_v13 = vcvt.s32.f32 %v988_v24  ;;  %v747_v24 = vcvt.f32.s32 %v3333_v43 }
 0x311   :  { %884 = vmin.xlane.f32.xlu1 %v883_v37  ;;  %v794_v28 = vcvt.s32.f32 %v792_v14  ;;  %v704_v14 = vcvt.f32.s32 %v703_v53  ;;  %v873_v53 = vcvt.f32.s32 %v3092_v56 }
 0x312   :  { %v3345_v16 = vpop.xlane.xlu1 %768 }
 0x313   :  { %vm770_vm15 = vcmp.eq.f32.partialorder %v3198_v57, %v3345_v16  ;;  %v820_v57 = vand.u32 65535, %v3260_v9  ;;  %v948_v9 = vcvt.s32.f32 %v946_v60 }
 0x314   :  { %v771_v12 = vsel %vm770_vm15, %v766_v46, inf }
 0x315   :  { %772 = vmin.xlane.f32.xlu1 %v771_v12  ;;  %v822_v33 = vcvt.s32.f32 %v820_v57 }
 0x319   :  { %898 = vmin.xlane.f32.xlu1 %v897_v61  ;;  %v691_v61 = vcvt.f32.s32 %v3319_v8  ;;  %v733_v8 = vcvt.f32.s32 %v3135_v5  ;;  %v761_v5 = vcvt.f32.s32 %v3160_v36  ;;  %v874_v36 = vshll.u32 %v873_v53, 16  ;;  %v2488_v53 = vld [vmem:[%s3831_s0 + $0x8] sm:$0xff] }
 0x36e   :  { %v3352_v42 = vpop.xlane.xlu1 %796 }
 0x36f   :  { %vm798_vm3 = vcmp.eq.f32.partialorder %v3249_v63, %v3352_v42  ;;  %v848_v63 = vand.u32 65535, %v3268_v1 }
 0x370   :  { %v799_v31 = vsel %vm798_vm3, %v794_v28, inf }
 0x371   :  { %800 = vmin.xlane.f32.xlu1 %v799_v31 }
 0x372   :  { %v3357_v6 = vpop.xlane.xlu1 %950 }
 0x373   :  { %vm952_vm5 = vcmp.eq.f32.partialorder %v3257_v18, %v3357_v6  ;;  %v1016_v18 = vand.u32 65535, %v3285_v19  ;;  %v1072_v19 = vand.u32 65535, %v3305_v35 }
 0x374   :  { %v953_v22 = vsel %vm952_vm5, %v948_v9, inf }
 0x375   :  { %926 = vmin.xlane.f32.xlu1 %v925_v47  ;;  %v731_v47 = vpop.xlane.xlu0 %730  ;;  %v1018_v7 = vcvt.s32.f32 %v1016_v18  ;;  %v1074_v57 = vcvt.s32.f32 %v1072_v19 }
 0x376   :  { %v3360_v39 = vpop.xlane.xlu1 %824  ;;  %v732_v9 = vcvt.f32.s32 %v731_v47  ;;  %v762_v47 = vshll.u32 %v761_v5, 16 }
 0x377   :  { %vm826_vm4 = vcmp.eq.f32.partialorder %v3265_v34, %v3360_v39  ;;  %v850_v34 = vcvt.s32.f32 %v848_v63  ;;  %v719_v63 = vcvt.f32.s32 %v3327_v10 }
 0x378   :  { %v827_v50 = vsel %vm826_vm4, %v822_v33, inf }
 0x379   :  { %828 = vmin.xlane.f32.xlu1 %v827_v50  ;;  %v720_v10 = vshll.u32 %v719_v63, 16 }
 0x37a   :  { %v3367_v55 = vpop.xlane.xlu1 %852 }
 0x37b   :  { %vm854_vm6 = vcmp.eq.f32.partialorder %v3273_v20, %v3367_v55  ;;  %v1044_v20 = vand.u32 65535, %v3293_v58 }
 0x37c   :  { %v855_v41 = vsel %vm854_vm6, %v850_v34, inf }
 0x37d   :  { %954 = vmin.xlane.f32.xlu1 %v953_v22  ;;  %v1046_v62 = vcvt.s32.f32 %v1044_v20 }
 0x37e   :  { %v3372_v15 = vpop.xlane.xlu1 %992 }
 0x37f   :  { %vm994_vm7 = vcmp.eq.f32.partialorder %v3282_v48, %v3372_v15  ;;  %v705_v48 = vcvt.f32.s32 %v3113_v44 }
 0x380   :  { %v995_v37 = vsel %vm994_vm7, %v990_v13, inf }
 0x381   :  { %856 = vmin.xlane.f32.xlu1 %v855_v41  ;;  %v706_v28 = vshll.u32 %v705_v48, 16  ;;  %v748_v48 = vshll.u32 %v747_v24, 16 }
 0x382   :  { %v3377_v1 = vpop.xlane.xlu1 %1020 }
 0x383   :  { %vm1022_vm8 = vcmp.eq.f32.partialorder %v3290_v2, %v3377_v1  ;;  %v871_v2 = vpop.xlane.xlu0 %870  ;;  %v707_v44 = vadd.s32 %v706_v28, %v704_v14  ;;  %v775_v28 = vcvt.f32.s32 %v3345_v16 }
 0x384   :  { %v1023_v46 = vsel %vm1022_vm8, %v1018_v7, inf  ;;  %v872_v20 = vcvt.f32.s32 %v871_v2 }
 0x385   :  { %996 = vmin.xlane.f32.xlu1 %v995_v37  ;;  %vm1090_vm13 = vcmp.eq.s32.totalorder %v2881_v4, %v707_v44  ;;  %v901_v44 = vcvt.f32.s32 %v3324_v32 }
 0x386   :  { %v3382_v29 = vpop.xlane.xlu1 %1048  ;;  %v3422_v2 = vadd.s32 %v874_v36, %v872_v20 }
 0x387   :  { %vm1050_vm10 = vcmp.eq.f32.partialorder %v3302_v51, %v3382_v29  ;;  %v692_v51 = vshll.u32 %v691_v61, 16  ;;  %v759_v35 = vpop.xlane.xlu0 %758 }
 0x388   :  { %v1051_v58 = vsel %vm1050_vm10, %v1046_v62, inf  ;;  %v760_v13 = vcvt.f32.s32 %v759_v35  ;;  %vm1102_vm6 = vcmp.eq.s32.totalorder %v2881_v4, %v3422_v2 }
 0x389   :  { %1024 = vmin.xlane.f32.xlu1 %v1023_v46  ;;  %v887_v46 = vcvt.f32.s32 %v3314_v21  ;;  %v789_v21 = vcvt.f32.s32 %v3185_v27  ;;  %v915_v27 = vcvt.f32.s32 %v3124_v0 }
 0x38a   :  { %v3388_v12 = vpop.xlane.xlu1 %1076  ;;  %v763_v62 = vadd.s32 %v762_v47, %v760_v13 }
 0x38b   :  { %vm1078_vm11 = vcmp.eq.f32.partialorder %v3316_v38, %v3388_v12  ;;  %v734_v38 = vshll.u32 %v733_v8, 16  ;;  %v913_v34 = vpop.xlane.xlu0 %912  ;;  %v790_v16 = vshll.u32 %v789_v21, 16  ;;  %v776_v8 = vshll.u32 %v775_v28, 16 }
 0x38c   :  { %v1079_v33 = vsel %vm1078_vm11, %v1074_v57, inf  ;;  %vm1094_vm5 = vcmp.eq.s32.totalorder %v2881_v4, %v763_v62  ;;  %v914_v35 = vcvt.f32.s32 %v913_v34  ;;  %v916_v32 = vshll.u32 %v915_v27, 16 }
 0x38d   :  { %1052 = vmin.xlane.f32.xlu1 %v1051_v58  ;;  %v735_v18 = vadd.s32 %v734_v38, %v732_v9  ;;  %v888_v58 = vshll.u32 %v887_v46, 16  ;;  %v2527_v38 = vmov 1.0|1.0   ;;  %v803_v62 = vcvt.f32.s32 %v3352_v42 }
 0x38e   :  { %v689_v31 = vpop.xlane.xlu1 %688  ;;  %v929_v28 = vcvt.f32.s32 %v3340_v59  ;;  %v971_v59 = vcvt.f32.s32 %v3204_v23  ;;  %v1083_v34 = vcvt.f32.s32 %v3388_v12 }
 0x38f   :  { %v690_v60 = vcvt.f32.s32 %v689_v31  ;;  %vm1092_vm2 = vcmp.eq.s32.totalorder %v2881_v4, %v735_v18  ;;  %v787_v43 = vpop.xlane.xlu0 %786 }
 0x390   :  { %v788_v57 = vcvt.f32.s32 %v787_v43  ;;  %v943_v43 = vcvt.f32.s32 %v3175_v25  ;;  %v831_v25 = vcvt.f32.s32 %v3360_v39 }
 0x391   :  { %v3393_v50 = vadd.s32 %v692_v51, %v690_v60  ;;  %1080 = vmin.xlane.f32.xlu1 %v1079_v33 }
 0x392   :  { %v3443_v0 = vadd.s32 %v790_v16, %v788_v57  ;;  %v944_v27 = vshll.u32 %v943_v43, 16  ;;  %v1013_v43 = vcvt.f32.s32 %v3219_v45  ;;  %v1027_v45 = vcvt.f32.s32 %v3377_v1 }
 0x393   :  { %vm1089_vm12 = vcmp.eq.s32.totalorder %v2881_v4, %v3393_v50  ;;  %v2489_v50 = vld [vmem:[%s3831_s0] sm:$0xff]  ;;  %v941_v46 = vpop.xlane.xlu0 %940 }
 0x394   :  { %2321 = vmatmul.mubr.msk.f32.gmra.mrb[2].mxu1 %vm1089_vm12, %v2526_v26 }
 0x395   :  { %2323 = vmatprep.mubr.msk.f32.mxu1 %vm1090_vm13, %v2526_v26 }
 0x396   :  { %v717_v22 = vpop.xlane.xlu1 %716 }
 0x397   :  { %v718_v41 = vcvt.f32.s32 %v717_v22  ;;  %v902_v22 = vshll.u32 %v901_v44, 16 }
 0x399   :  { %v721_v37 = vadd.s32 %v720_v10, %v718_v41  ;;  %v3455_v10 = vadd.s32 %v916_v32, %v914_v35 }
 0x39a   :  { %v745_v7 = vpop.xlane.xlu1 %744 }
 0x39b   :  { %v746_v19 = vcvt.f32.s32 %v745_v7  ;;  %vm1091_vm14 = vcmp.eq.s32.totalorder %v2881_v4, %v721_v37 }
 0x39c   :  { %2324 = vmatmul.mubr.msk.f32.gmra.mrb[4].mxu1 %vm1091_vm14, %v2526_v26  ;;  %vm3415_vm15 = vmpackc.low %vm1091_vm14, %vm1090_vm13  ;;  %vm1096_vm13 = vcmp.eq.s32.totalorder %v2881_v4, %v3443_v0  ;;  %vm1105_vm14 = vcmp.eq.s32.totalorder %v2881_v4, %v3455_v10  ;;  %v1069_v10 = vcvt.f32.s32 %v3229_v11 }
 0x39d   :  { %v749_v61 = vadd.s32 %v748_v48, %v746_v19  ;;  %2326 = vmatprep.mubr.msk.f32.mxu1 %vm1092_vm2, %v2526_v26  ;;  %v815_v48 = vpop.xlane.xlu0 %814  ;;  %v817_v19 = vcvt.f32.s32 %v3196_v17  ;;  %v845_v17 = vcvt.f32.s32 %v3209_v49 }
 0x39e   :  { %v885_v14 = vpop.xlane.xlu1 %884  ;;  %v1070_v11 = vshll.u32 %v1069_v10, 16 }
 0x39f   :  { %v886_v31 = vcvt.f32.s32 %v885_v14  ;;  %vm1093_vm3 = vcmp.eq.s32.totalorder %v2881_v4, %v749_v61  ;;  %v816_v61 = vcvt.f32.s32 %v815_v48  ;;  %v818_v21 = vshll.u32 %v817_v19, 16 }
 0x3a0   :  { %2327 = vmatmul.mubr.msk.f32.gmra.mrb[6].mxu1 %vm1093_vm3, %v2526_v26  ;;  %vm3427_vm4 = vmpackc.low %vm1093_vm3, %vm1092_vm2  ;;  %v942_v14 = vcvt.f32.s32 %v941_v46  ;;  %v846_v39 = vshll.u32 %v845_v17, 16  ;;  %v999_v19 = vcvt.f32.s32 %v3372_v15 }
 0x3a1   :  { %v3433_v60 = vadd.s32 %v888_v58, %v886_v31  ;;  %2329 = vmatprep.mubr.msk.f32.mxu1 %vm1094_vm5, %v2526_v26  ;;  %vm2451_vm3 = vmpackc.low %vm1089_vm12, %vm1088_vm9  ;;  %v969_v36 = vpop.xlane.xlu0 %968  ;;  %v804_v31 = vshll.u32 %v803_v62, 16  ;;  %v819_v16 = vadd.s32 %v818_v21, %v816_v61 }
 0x3a2   :  { %v773_v33 = vpop.xlane.xlu1 %772  ;;  %v3514_v35 = vadd.s32 %v944_v27, %v942_v14 }
 0x3a3   :  { %v774_v63 = vcvt.f32.s32 %v773_v33  ;;  %vm1103_vm7 = vcmp.eq.s32.totalorder %v2881_v4, %v3433_v60  ;;  %vm1098_vm12 = vcmp.eq.s32.totalorder %v2881_v4, %v819_v16  ;;  %v1041_v16 = vcvt.f32.s32 %v3224_v30 }
 0x3a4   :  { %vm2445_vm8 = vmpackc.low %vm1103_vm7, %vm1102_vm6 }
 0x3a5   :  { %v777_v9 = vadd.s32 %v776_v8, %v774_v63  ;;  %2446 = vmatprep.subr.msk.bf16.mxu1 %vm2445_vm8, %v2527_v38  ;;  %v843_v44 = vpop.xlane.xlu0 %842  ;;  %v930_v8 = vshll.u32 %v929_v28, 16  ;;  %v1000_v28 = vshll.u32 %v999_v19, 16  ;;  %v1042_v30 = vshll.u32 %v1041_v16, 16 }
 0x3a6   :  { %v899_v5 = vpop.xlane.xlu1 %898  ;;  %2448 = vmatpush3.bf16.xpose.msk.msra.mxu1 %vm3242_vm1, %v2527_v38  ;;  %v844_v32 = vcvt.f32.s32 %v843_v44 }
 0x3a7   :  { %v900_v24 = vcvt.f32.s32 %v899_v5  ;;  %vm1095_vm10 = vcmp.eq.s32.totalorder %v2881_v4, %v777_v9  ;;  %v970_v9 = vcvt.f32.s32 %v969_v36 }
 0x3a8   :  { %2330 = vmatmul.mubr.msk.f32.gmra.mrb[8].mxu1 %vm1095_vm10, %v2526_v26  ;;  %vm3461_vm11 = vmpackc.low %vm1095_vm10, %vm1094_vm5  ;;  %vm1107_vm5 = vcmp.eq.s32.totalorder %v2881_v4, %v3514_v35 }
 0x3a9   :  { %v3467_v41 = vadd.s32 %v902_v22, %v900_v24  ;;  %2332 = vmatprep.mubr.msk.f32.mxu1 %vm1096_vm13, %v2526_v26  ;;  %v983_v23 = vpop.xlane.xlu0 %982  ;;  %v957_v22 = vcvt.f32.s32 %v3357_v6  ;;  %v832_v24 = vshll.u32 %v831_v25, 16 }
 0x3ab   :  { %vm1104_vm1 = vcmp.eq.s32.totalorder %v2881_v4, %v3467_v41 }
 0x3ac   :  { %vm2449_vm2 = vmpackc.low %vm1105_vm14, %vm1104_vm1 }
 0x3ad   :  { %2450 = vmatprep.subr.msk.bf16.mxu1 %vm2449_vm2, %v2527_v38  ;;  %v1011_v56 = vpop.xlane.xlu0 %1010 }
 0x3ae   :  { %2452 = vmatpush3.bf16.xpose.msk.msra.mxu1 %vm2451_vm3, %v2527_v38  ;;  %v1012_v14 = vcvt.f32.s32 %v1011_v56 }
 0x3b0   :  { %v2319_v52 = vpop.f32.mrb[0].mxu1 }
 0x3b1   :  { %1408 = vst.msk [vmem:[%s3834_s3 + $0x8] sm:$0xff] %vm3837_vm0, %v2319_v52  ;;  %v1534_v18 = vsub.f32 %v2319_v52, %v2488_v53  ;;  %v1248_v54 = vpop.f32.mrb[1].mxu1  ;;  %v972_v53 = vshll.u32 %v971_v59, 16 }
 0x3b2   :  { %1407 = vst.msk [vmem:[%s3834_s3] sm:$0xff] %vm3837_vm0, %v1248_v54  ;;  %v1533_v13 = vsub.f32 %v1248_v54, %v2489_v50 }
 0x3b3   :  { %v1566_v37 = vmul.f32 %v1534_v18, %v1534_v18  ;;  %v847_v18 = vadd.s32 %v846_v39, %v844_v32  ;;  %v3542_v50 = vadd.s32 %v972_v53, %v970_v9 }
 0x3b4   :  { %v1565_v47 = vmul.f32 %v1533_v13, %v1533_v13  ;;  %v958_v13 = vshll.u32 %v957_v22, 16 }
 0x3b5   :  { %v1600_v20 = vsel %vm3837_vm0, %v1566_v37, 0.0  ;;  %v859_v37 = vcvt.f32.s32 %v3367_v55  ;;  %v984_v55 = vcvt.f32.s32 %v983_v23 }
 0x3b6   :  { %1601 = vadd.xlane.f32.xlu1 %v1600_v20  ;;  %v1597_v7 = vsel %vm3837_vm0, %v1565_v47, 0.0  ;;  %v985_v20 = vcvt.f32.s32 %v3214_v40 }
 0x3b7   :  { %1598 = vadd.xlane.f32.xlu0 %v1597_v7  ;;  %v860_v40 = vshll.u32 %v859_v37, 16 }
 0x3b8   :  { %v986_v62 = vshll.u32 %v985_v20, 16 }
 0x3ba   :  { %v987_v21 = vadd.s32 %v986_v62, %v984_v55 }
 0x3fe   :  { %v801_v58 = vpop.xlane.xlu1 %800 }
 0x3ff   :  { %v802_v57 = vcvt.f32.s32 %v801_v58  ;;  %v1039_v58 = vpop.xlane.xlu0 %1038 }
 0x400   :  { %v1040_v44 = vcvt.f32.s32 %v1039_v58 }
 0x401   :  { %v3511_v33 = vadd.s32 %v804_v31, %v802_v57  ;;  %v1014_v57 = vshll.u32 %v1013_v43, 16 }
 0x402   :  { %v927_v42 = vpop.xlane.xlu1 %926  ;;  %v1043_v60 = vadd.s32 %v1042_v30, %v1040_v44 }
 0x403   :  { %v928_v63 = vcvt.f32.s32 %v927_v42  ;;  %vm1097_vm9 = vcmp.eq.s32.totalorder %v2881_v4, %v3511_v33  ;;  %v1015_v1 = vadd.s32 %v1014_v57, %v1012_v14  ;;  %v1028_v42 = vshll.u32 %v1027_v45, 16  ;;  %v1067_v32 = vpop.xlane.xlu0 %1066 }
 0x404   :  { %2333 = vmatmul.mubr.msk.f32.gmra.mrb[10].mxu1 %vm1097_vm9, %v2526_v26  ;;  %v1068_v12 = vcvt.f32.s32 %v1067_v32  ;;  %v1439_v33 = vcvt.s32.f32 %v2881_v4 }
 0x405   :  { %v3525_v49 = vadd.s32 %v930_v8, %v928_v63  ;;  %2335 = vmatprep.mubr.msk.f32.mxu1 %vm1098_vm12, %v2526_v26  ;;  %v1055_v8 = vcvt.f32.s32 %v3382_v29 }
 0x406   :  { %v829_v5 = vpop.xlane.xlu1 %828  ;;  %v1071_v0 = vadd.s32 %v1070_v11, %v1068_v12 }
 0x407   :  { %v830_v52 = vcvt.f32.s32 %v829_v5  ;;  %vm1106_vm8 = vcmp.eq.s32.totalorder %v2881_v4, %v3525_v49  ;;  %v1056_v63 = vshll.u32 %v1055_v8, 16  ;;  %v1084_v49 = vshll.u32 %v1083_v34, 16 }
 0x408   :  { %vm2453_vm10 = vmpackc.low %vm1107_vm5, %vm1106_vm8 }
 0x409   :  { %v833_v54 = vadd.s32 %v832_v24, %v830_v52  ;;  %2454 = vmatprep.subr.msk.bf16.mxu1 %vm2453_vm10, %v2527_v38  ;;  %vm1100_vm10 = vcmp.eq.s32.totalorder %v2881_v4, %v847_v18 }
 0x40a   :  { %v955_v6 = vpop.xlane.xlu1 %954  ;;  %2456 = vmatpush3.bf16.xpose.msk.msra.mxu1 %vm3415_vm15, %v2527_v38  ;;  %vm1109_vm15 = vcmp.eq.s32.totalorder %v2881_v4, %v3542_v50 }
 0x40b   :  { %v956_v47 = vcvt.f32.s32 %v955_v6  ;;  %vm1099_vm2 = vcmp.eq.s32.totalorder %v2881_v4, %v833_v54 }
 0x40c   :  { %2336 = vmatmul.mubr.msk.f32.gmra.mrb[12].mxu1 %vm1099_vm2, %v2526_v26  ;;  %vm3553_vm3 = vmpackc.low %vm1099_vm2, %vm1098_vm12 }
 0x40d   :  { %v3558_v46 = vadd.s32 %v958_v13, %v956_v47  ;;  %2338 = vmatprep.mubr.msk.f32.mxu1 %vm1100_vm10, %v2526_v26 }
 0x40e   :  { %v857_v48 = vpop.xlane.xlu1 %856 }
 0x40f   :  { %v858_v36 = vcvt.f32.s32 %v857_v48  ;;  %vm1108_vm12 = vcmp.eq.s32.totalorder %v2881_v4, %v3558_v46 }
 0x410   :  { %vm2457_vm2 = vmpackc.low %vm1109_vm15, %vm1108_vm12 }
 0x411   :  { %v861_v61 = vadd.s32 %v860_v40, %v858_v36  ;;  %2458 = vmatprep.subr.msk.bf16.mxu1 %vm2457_vm2, %v2527_v38 }
 0x412   :  { %v997_v15 = vpop.xlane.xlu1 %996  ;;  %2460 = vmatpush3.bf16.xpose.msk.msra.mxu1 %vm3427_vm4, %v2527_v38  ;;  %vm1110_vm4 = vcmp.eq.s32.totalorder %v2881_v4, %v987_v21 }
 0x413   :  { %v998_v31 = vcvt.f32.s32 %v997_v15  ;;  %vm1101_vm0 = vcmp.eq.s32.totalorder %v2881_v4, %v861_v61 }
 0x414   :  { %2339 = vmatmul.mubr.msk.f32.gmra.mrb[14].mxu1 %vm1101_vm0, %v2526_v26  ;;  %vm3584_vm2 = vmpackc.low %vm1101_vm0, %vm1100_vm10 }
 0x415   :  { %v1001_v51 = vadd.s32 %v1000_v28, %v998_v31  ;;  %2341 = vmatprep.mubr.msk.f32.mxu1 %vm1102_vm6, %v2526_v26 }
 0x416   :  { %v1025_v17 = vpop.xlane.xlu1 %1024 }
 0x417   :  { %v1026_v25 = vcvt.f32.s32 %v1025_v17  ;;  %vm1111_vm0 = vcmp.eq.s32.totalorder %v2881_v4, %v1001_v51 }
 0x418   :  { %2342 = vmatmul.mubr.msk.f32.gmra.mrb[16].mxu1 %vm1103_vm7, %v2526_v26  ;;  %vm2461_vm6 = vmpackc.low %vm1111_vm0, %vm1110_vm4  ;;  %vm1112_vm7 = vcmp.eq.s32.totalorder %v2881_v4, %v1015_v1 }
 0x419   :  { %v1029_v2 = vadd.s32 %v1028_v42, %v1026_v25  ;;  %2344 = vmatprep.mubr.msk.f32.mxu1 %vm1104_vm1, %v2526_v26  ;;  %2462 = vmatprep.subr.msk.bf16.mxu1 %vm2461_vm6, %v2527_v38  ;;  %vm2467_vm6 = vmpackc.low %vm1097_vm9, %vm1096_vm13  ;;  %vm1116_vm9 = vcmp.eq.s32.totalorder %v2881_v4, %v1071_v0  ;;  %v2528_v42 = vmov 1966171168  }
 0x41a   :  { %v1053_v29 = vpop.xlane.xlu1 %1052  ;;  %2464 = vmatpush3.bf16.xpose.msk.msra.mxu1 %vm3461_vm11, %v2527_v38  ;;  %vm1114_vm11 = vcmp.eq.s32.totalorder %v2881_v4, %v1043_v60  ;;  %v1515_v8 = vunpack.c.l.s4 %v2528_v42 }
 0x41b   :  { %v1054_v59 = vcvt.f32.s32 %v1053_v29  ;;  %vm1113_vm10 = vcmp.eq.s32.totalorder %v2881_v4, %v1029_v2  ;;  %v1518_v2 = vshrl.u32 %v508_v3, 7 }
 0x41c   :  { %2345 = vmatmul.mubr.msk.f32.gmra.mrb[18].mxu1 %vm1105_vm14, %v2526_v26  ;;  %vm2465_vm1 = vmpackc.low %vm1113_vm10, %vm1112_vm7  ;;  %v1516_v30 = vunpack.c.0.s8 %v1515_v8 }
 0x41d   :  { %v1057_v41 = vadd.s32 %v1056_v63, %v1054_v59  ;;  %2347 = vmatprep.mubr.msk.f32.mxu1 %vm1106_vm8, %v2526_v26  ;;  %2466 = vmatprep.subr.msk.bf16.mxu1 %vm2465_vm1, %v2527_v38 }
 0x41e   :  { %v1081_v39 = vpop.xlane.xlu1 %1080 }
 0x41f   :  { %v1082_v9 = vcvt.f32.s32 %v1081_v39  ;;  %vm1115_vm14 = vcmp.eq.s32.totalorder %v2881_v4, %v1057_v41  ;;  %v1519_v41 = vsub.s32 %v1516_v30, %v1518_v2 }
 0x420   :  { %2348 = vmatmul.mubr.msk.f32.gmra.mrb[20].mxu1 %vm1107_vm5, %v2526_v26  ;;  %vm2469_vm8 = vmpackc.low %vm1115_vm14, %vm1114_vm11 }
 0x421   :  { %2350 = vmatprep.mubr.msk.f32.mxu1 %vm1108_vm12, %v2526_v26  ;;  %v1085_v35 = vadd.s32 %v1084_v49, %v1082_v9 }
 0x422   :  { %2468 = vmatpush3.bf16.xpose.msk.msra.mxu1 %vm2467_vm6, %v2527_v38 }
 0x423   :  { %2470 = vmatprep.subr.msk.bf16.mxu1 %vm2469_vm8, %v2527_v38  ;;  %vm1117_vm13 = vcmp.eq.s32.totalorder %v2881_v4, %v1085_v35 }
 0x424   :  { %2351 = vmatmul.mubr.msk.f32.gmra.mrb[22].mxu1 %vm1109_vm15, %v2526_v26  ;;  %vm2473_vm5 = vmpackc.low %vm1117_vm13, %vm1116_vm9  ;;  %vm3852_vm15 = vcmask 261120  }
 0x425   :  { %2353 = vmatprep.mubr.msk.f32.mxu1 %vm1110_vm4, %v2526_v26  ;;  %vm3853_vm12 = vmmov %vm3852_vm15 }
 0x428   :  { %2354 = vmatmul.mubr.msk.f32.gmra.mrb[24].mxu1 %vm1111_vm0, %v2526_v26 }
 0x429   :  { %2356 = vmatprep.mubr.msk.f32.mxu1 %vm1112_vm7, %v2526_v26 }
 0x42a   :  { %2472 = vmatpush3.bf16.xpose.msk.msra.mxu1 %vm3553_vm3, %v2527_v38  ;;  %vm1824_vm3 = vcmask 7168  }
 0x42b   :  { %2474 = vmatprep.subr.msk.bf16.mxu1 %vm2473_vm5, %v2527_v38 }
 0x42c   :  { %2357 = vmatmul.mubr.msk.f32.gmra.mrb[26].mxu1 %vm1113_vm10, %v2526_v26 }
 0x42d   :  { %2359 = vmatprep.mubr.msk.f32.mxu1 %vm1114_vm11, %v2526_v26 }
 0x430   :  { %2360 = vmatmul.mubr.msk.f32.gmra.mrb[28].mxu1 %vm1115_vm14, %v2526_v26 }
 0x431   :  { %2362 = vmatprep.mubr.msk.f32.mxu1 %vm1116_vm9, %v2526_v26 }
 0x432   :  { %2476 = vmatpush3.bf16.xpose.msk.msra.mxu1 %vm3584_vm2, %v2527_v38  ;;  %vm3854_vm2 = vmmov %vm3853_vm12 }
 0x433   :  { %vm3855_vm4 = vmmov %vm3854_vm2 }
 0x434   :  { %2363 = vmatmul.mubr.msk.f32.gmra.mrb[30].mxu1 %vm1117_vm13, %v2526_v26  ;;  %vm3856_vm0 = vmmov %vm3854_vm2 }
 0x435   :  { %2203 = vmatprep.mubr.f32.mxu1 %v1439_v33  ;;  %vm3857_vm7 = vmmov %vm3856_vm0 }
 0x436   :  { %vm3858_vm10 = vmmov %vm3856_vm0 }
 0x437   :  { %vm3859_vm1 = vmmov %vm3856_vm0 }
 0x438   :  { %vm3860_vm11 = vmmov %vm3856_vm0 }
 0x439   :  { %2204 = vmatmul.mubr.f32.vlgmr.msra.gmra.mrb[32].mxu1 %v1439_v33  ;;  %vm3861_vm14 = vmmov %vm3856_vm0 }
 0x43a   :  { %vm3862_vm8 = vmmov %vm3856_vm0 }
 0x43b   :  { %vm3863_vm6 = vmmov %vm3856_vm0 }
 0x43c   :  { %vm3864_vm13 = vmmov %vm3856_vm0 }
 0x43d   :  { %vm3865_vm9 = vmmov %vm3856_vm0 }
 0x43e   :  { %vm3866_vm5 = vmmov %vm3856_vm0 }
 0x443   :  { %v1602_v5 = vpop.xlane.xlu1 %1601 }
 0x444   :  { %v1826_v23 = vsel %vm1824_vm3, %v1602_v5, 0.0  ;;  %v1599_v22 = vpop.xlane.xlu0 %1598 }
 0x445   :  { %v1825_v24 = vsel %vm1824_vm3, %v1599_v22, 0.0  ;;  %vm3867_vm3 = vmmov %vm3856_vm0 }
 0x446   :  { %v1827_v52 = vadd.f32 %v1826_v23, %v1825_v24 }
 0x448   :  { %1888 = vadd.xlane.f32.xlu0 %v1827_v52 }
 0x467   :  { %v2322_v53 = vpop.f32.mrb[2].mxu1 }
 0x468   :  { %1410 = vst.msk [vmem:[%s3834_s3 + $0x18] sm:$0xff] %vm3852_vm15, %v2322_v53  ;;  %v1258_v4 = vpop.f32.mrb[3].mxu1  ;;  %vm3868_vm15 = vmmov %vm3856_vm0 }
 0x469   :  { %1409 = vst.msk [vmem:[%s3834_s3 + $0x10] sm:$0xff] %vm3853_vm12, %v1258_v4  ;;  %vm3869_vm12 = vmmov %vm3856_vm0 }
 0x46f   :  { %v2325_v26 = vpop.f32.mrb[4].mxu1 }
 0x470   :  { %1412 = vst.msk [vmem:[%s3834_s3 + $0x28] sm:$0xff] %vm3854_vm2, %v2325_v26  ;;  %v1268_v38 = vpop.f32.mrb[5].mxu1  ;;  %vm3870_vm2 = vmmov %vm3856_vm0 }
 0x471   :  { %1411 = vst.msk [vmem:[%s3834_s3 + $0x20] sm:$0xff] %vm3855_vm4, %v1268_v38  ;;  %vm3871_vm4 = vmmov %vm3856_vm0 }
 0x473   :  { %v2328_v18 = vpop.f32.mrb[6].mxu1 }
 0x474   :  { %1414 = vst.msk [vmem:[%s3834_s3 + $0x38] sm:$0xff] %vm3856_vm0, %v2328_v18  ;;  %v1278_v54 = vpop.f32.mrb[7].mxu1 }
 0x475   :  { %1413 = vst.msk [vmem:[%s3834_s3 + $0x30] sm:$0xff] %vm3857_vm7, %v1278_v54  ;;  %vm3872_vm7 = vmmov %vm3856_vm0 }
 0x47b   :  { %v2331_v50 = vpop.f32.mrb[8].mxu1 }
 0x47c   :  { %1416 = vst.msk [vmem:[%s3834_s3 + $0x48] sm:$0xff] %vm3858_vm10, %v2331_v50  ;;  %v1288_v6 = vpop.f32.mrb[9].mxu1  ;;  %vm3873_vm10 = vmmov %vm3856_vm0 }
 0x47d   :  { %1415 = vst.msk [vmem:[%s3834_s3 + $0x40] sm:$0xff] %vm3859_vm1, %v1288_v6  ;;  %vm3874_vm1 = vmmov %vm3856_vm0 }
 0x4d5   :  { %v1889_v13 = vpop.xlane.xlu0 %1888 }
 0x4d6   :  { %v1890_v37 = vrot.slane %v1889_v13, 4 }
 0x4d7   :  { %v2334_v47 = vpop.f32.mrb[10].mxu1 }
 0x4d8   :  { %v1891_v20 = vadd.f32 %v1890_v37, %v1889_v13  ;;  %1418 = vst.msk [vmem:[%s3834_s3 + $0x58] sm:$0xff] %vm3860_vm11, %v2334_v47  ;;  %v1298_v7 = vpop.f32.mrb[11].mxu1  ;;  %vm3875_vm11 = vmmov %vm3856_vm0 }
 0x4d9   :  { %1417 = vst.msk [vmem:[%s3834_s3 + $0x50] sm:$0xff] %vm3861_vm14, %v1298_v7  ;;  %vm3876_vm14 = vmmov %vm3856_vm0 }
 0x4da   :  { %v1892_v56 = vrot.slane %v1891_v20, 2 }
 0x4dc   :  { %v1893_v46 = vadd.f32 %v1892_v56, %v1891_v20 }
 0x4de   :  { %v1894_v55 = vrot.slane %v1893_v46, 1 }
 0x4df   :  { %v2337_v48 = vpop.f32.mrb[12].mxu1 }
 0x4e0   :  { %1420 = vst.msk [vmem:[%s3834_s3 + $0x68] sm:$0xff] %vm3862_vm8, %v2337_v48  ;;  %v1308_v40 = vpop.f32.mrb[13].mxu1  ;;  %v1895_v19 = vadd.f32 %v1894_v55, %v1893_v46  ;;  %vm3877_vm8 = vmmov %vm3856_vm0 }
 0x4e1   :  { %1419 = vst.msk [vmem:[%s3834_s3 + $0x60] sm:$0xff] %vm3863_vm6, %v1308_v40  ;;  %vm3878_vm6 = vmmov %vm3856_vm0 }
 0x4e2   :  { %2481 = vpush %v1895_v19 }
 0x4e7   :  { %v2340_v36 = vpop.f32.mrb[14].mxu1 }
 0x4e8   :  { %1422 = vst.msk [vmem:[%s3834_s3 + $0x78] sm:$0xff] %vm3864_vm13, %v2340_v36  ;;  %v1318_v62 = vpop.f32.mrb[15].mxu1  ;;  %vm3879_vm13 = vmmov %vm3856_vm0 }
 0x4e9   :  { %1421 = vst.msk [vmem:[%s3834_s3 + $0x70] sm:$0xff] %vm3865_vm9, %v1318_v62  ;;  %vm3880_vm9 = vmmov %vm3856_vm0 }
 0x4eb   :  { %v2343_v43 = vpop.f32.mrb[16].mxu1 }
 0x4ec   :  { %1424 = vst.msk [vmem:[%s3834_s3 + $0x88] sm:$0xff] %vm3866_vm5, %v2343_v43  ;;  %v1328_v61 = vpop.f32.mrb[17].mxu1  ;;  %vm1530_vm5 = vcmp.lt.s32.totalorder %v508_v3, 256 }
 0x4ed   :  { %1423 = vst.msk [vmem:[%s3834_s3 + $0x80] sm:$0xff] %vm3867_vm3, %v1328_v61 }
 0x4ef   :  { %v2346_v21 = vpop.f32.mrb[18].mxu1 }
 0x4f0   :  { %1426 = vst.msk [vmem:[%s3834_s3 + $0x98] sm:$0xff] %vm3868_vm15, %v2346_v21  ;;  %v1338_v14 = vpop.f32.mrb[19].mxu1 }
 0x4f1   :  { %1425 = vst.msk [vmem:[%s3834_s3 + $0x90] sm:$0xff] %vm3869_vm12, %v1338_v14 }
 0x4f3   :  { %v2349_v15 = vpop.f32.mrb[20].mxu1 }
 0x4f4   :  { %1428 = vst.msk [vmem:[%s3834_s3 + $0xa8] sm:$0xff] %vm3870_vm2, %v2349_v15  ;;  %v1348_v58 = vpop.f32.mrb[21].mxu1 }
 0x4f5   :  { %1427 = vst.msk [vmem:[%s3834_s3 + $0xa0] sm:$0xff] %vm3871_vm4, %v1348_v58 }
 0x4f7   :  { %v2352_v28 = vpop.f32.mrb[22].mxu1 }
 0x4f8   :  { %1430 = vst.msk [vmem:[%s3834_s3 + $0xb8] sm:$0xff] %vm3856_vm0, %v2352_v28  ;;  %v1358_v45 = vpop.f32.mrb[23].mxu1 }
 0x4f9   :  { %1429 = vst.msk [vmem:[%s3834_s3 + $0xb0] sm:$0xff] %vm3872_vm7, %v1358_v45 }
 0x4fb   :  { %v2355_v31 = vpop.f32.mrb[24].mxu1 }
 0x4fc   :  { %1432 = vst.msk [vmem:[%s3834_s3 + $0xc8] sm:$0xff] %vm3873_vm10, %v2355_v31  ;;  %v1368_v57 = vpop.f32.mrb[25].mxu1 }
 0x4fd   :  { %1431 = vst.msk [vmem:[%s3834_s3 + $0xc0] sm:$0xff] %vm3874_vm1, %v1368_v57 }
 0x4ff   :  { %v2358_v27 = vpop.f32.mrb[26].mxu1 }
 0x500   :  { %1434 = vst.msk [vmem:[%s3834_s3 + $0xd8] sm:$0xff] %vm3875_vm11, %v2358_v27  ;;  %v1378_v16 = vpop.f32.mrb[27].mxu1 }
 0x501   :  { %1433 = vst.msk [vmem:[%s3834_s3 + $0xd0] sm:$0xff] %vm3876_vm14, %v1378_v16 }
 0x503   :  { %v2361_v51 = vpop.f32.mrb[28].mxu1 }
 0x504   :  { %1436 = vst.msk [vmem:[%s3834_s3 + $0xe8] sm:$0xff] %vm3877_vm8, %v2361_v51  ;;  %v1388_v1 = vpop.f32.mrb[29].mxu1 }
 0x505   :  { %1435 = vst.msk [vmem:[%s3834_s3 + $0xe0] sm:$0xff] %vm3878_vm6, %v1388_v1 }
 0x507   :  { %v2364_v44 = vpop.f32.mrb[30].mxu1 }
 0x508   :  { %1438 = vst.msk [vmem:[%s3834_s3 + $0xf8] sm:$0xff] %vm3879_vm13, %v2364_v44  ;;  %v1398_v17 = vpop.f32.mrb[31].mxu1 }
 0x509   :  { %1437 = vst.msk [vmem:[%s3834_s3 + $0xf0] sm:$0xff] %vm3880_vm9, %v1398_v17 }
 0x50c   :  { %v1506_v25 = vpop.f32.mrb[32].mxu1 }
 0x50d   :  { %v2477_v29 = vtrunc.f32 %v1506_v25  ;;  %v1508_v60 = vpop.f32.mrb[33].mxu1 }
 0x50e   :  { %v2479_v63 = vtrunc.f32 %v1508_v60 }
 0x50f   :  { %v2478_v59 = vcvt.f32.s32 %v2477_v29 }
 0x510   :  { %v2480_v34 = vcvt.f32.s32 %v2479_v63 }
 0x512   :  { %v1513_v32 = vcombine.low %v2478_v59, %v2480_v34 }
 0x513   :  { %s2482_s23 = spop %2481 }
 0x514   :  { %v1520_v39 = vrot.slane %v1513_v32, %v1519_v41  ;;  %1898 = sst [smem:[#allocation5]] %s2482_s23 }
 0x515   :  { %2499 = shalt.err (!%p2496_p2)
}
 0x516   :  { %s2530_s6 = smov [#allocation5]   ;;  %v1527_v3 = vrot.slane %v1520_v39, %v1519_v41  ;;  %s2500_s9 = scalar_lea.vmem %s1908_s25, 32 }
 0x517   :  { %1918 = dma.smem_to_hbm %s2530_s6, 16, %s3836_s5, [#allocation4]  }
 0x518   :  { %1532 = vst.msk [vmem:[#allocation2] sm:$0x3] %vm1530_vm5, %v1527_v3  ;;  %p2501_p3 = scmp.ne.s32.totalorder %s1908_s25, %s2500_s9  ;;  %p2505_p4 = scmp.lt.s32.totalorder %s1908_s25, %s1908_s25 }
 0x519   :  { %p2506_p5 = scmp.lt.s32.totalorder %s2500_s9, %s2500_s9 }
 0x51b   :  { %p2507_p6 = por %p2506_p5, %p2505_p4 }
 0x51d   :  { %p2508_p7 = pnand %p2507_p6, %p2501_p3 }
 0x51f   :  { %2511 = shalt.err (!%p2508_p7)
}
 0x520   :  { %s2512_s12 = scalar_lea.hbm %s3835_s4, 32 }
 0x521   :  { %p2513_p8 = scmp.ne.s32.totalorder %s3835_s4, %s2512_s12  ;;  %p2516_p9 = scmp.lt.u32.totalorder %s2512_s12, %s3835_s4 }
 0x523   :  { %p2518_p10 = pnand %p2516_p9, %p2513_p8 }
 0x525   :  { %2521 = shalt.err (!%p2518_p10)
}
 0x526   :  { %1910 = dma.vmem_to_hbm [thread:$0]  %s1908_s25, 32, %s3835_s4, [#allocation3]  }
 0x527   :  { %2522 = dma.done.wait [#allocation3], 32  }
 0x528   :  { %2523 = vsyncadd [#allocation3], 4294967264 }
 0x529   :  { %2524 = dma.done.wait [#allocation4], 16  }
 0x52a   :  { %2525 = vsyncadd [#allocation4], 4294967280 }
 0x52b   :  { %1927 = sfence }
 0x52c   :  { %1928 = vsyncpa [#allocation3], 1 }
 0x52d   :  { %1929 = vsyncpa [#allocation4], 1 }

</bundles_post_ra>
